<compile_context>
chip_gen: v7x
topology: tpu7x:2x2x1
jax: 0.10.0
libtpu: 0.0.40
codegen_flags: <defaults>
</compile_context>

<pallas_src>
import functools

import jax
import jax.numpy as jnp
from jax.experimental import pallas as pl
from jax.experimental.pallas import tpu as pltpu


def _round_up(x, m):
    return ((x + m - 1) // m) * m


# ---------------------------------------------------------------------------
# Kernel
# ---------------------------------------------------------------------------
def _cx_kernel(t_ref, tsq_ref, s_ref, ssq_ref, o_ref, acc_ref, *,
               inv_bandwidth, n_valid, tile_s):
    """One (batch, source-strip) grid step.

    t_ref  : (1, Nt, K)      target features (matmul-ready, resident across strips)
    tsq_ref: (1, Nt, 1)      f32 squared norms of target pixels
    s_ref  : (1, K, TILE_S)  source feature strip
    ssq_ref: (1, 1, TILE_S)  f32 squared norms of the source strip columns
    o_ref  : (1, 1, 1)       per-image sum over target pixels of max similarity
    acc_ref: (Nt, 128)       lane-dense running row-max scratch
    """
    j = pl.program_id(1)
    last = pl.num_programs(1) - 1

    @pl.when(j == 0)
    def _init():
        acc_ref[...] = jnp.zeros_like(acc_ref)   # nsim >= 0, so 0 is the max identity

    t = t_ref[0]          # (Nt, K)
    s = s_ref[0]          # (K, TILE_S)
    tsq = tsq_ref[0]      # (Nt, 1)  f32
    ssq = ssq_ref[0]      # (1, TILE_S) f32

    # dist[i, j] = ||t_i||^2 - 2 <t_i, s_j> + ||s_j||^2
    # One MXU contraction (bf16 or f32 features, f32 accumulate) + two f32
    # VPU broadcast-adds (the VPU has slack in the MXU-bound large-C regime).
    d = jnp.dot(t, s, preferred_element_type=jnp.float32)        # (Nt, TILE_S)
    dist = jnp.maximum((tsq - 2.0 * d) + ssq, 0.0)                # clamp_(min=0.0)

    # Per-column (over the TARGET axis) min / softmax-style normalisation.
    # exp((offset - d/m)/bw) == exp(offset/bw) * exp(-d/(m*bw)); the constant
    # cancels in the column-sum normalisation, so offset is folded away.
    min_dist = jnp.min(dist, axis=0, keepdims=True)               # (1, TILE_S)
    colscale = inv_bandwidth / (min_dist + 1e-5)                  # exact, tiny row
    sim = jnp.exp(-dist * colscale)                               # EUP
    inv_colsum = 1.0 / jnp.sum(sim, axis=0, keepdims=True)        # exact, tiny row
    nsim = sim * inv_colsum

    nfold = tile_s // 128

    def fold_and_accumulate(x):
        # Fold TILE_S lanes down to 128 with static-slice maxes (pure VPU),
        # then elementwise-max into the lane-dense accumulator.
        m = x[:, 0:128]
        for c in range(1, nfold):
            m = jnp.maximum(m, x[:, c * 128:(c + 1) * 128])
        acc_ref[...] = jnp.maximum(acc_ref[...], m)

    if n_valid is None:
        fold_and_accumulate(nsim)
    else:
        # Padded source columns only exist on the last strip; mask them there only.
        @pl.when(j != last)
        def _bulk():
            fold_and_accumulate(nsim)

        @pl.when(j == last)
        def _masked():
            col = j * tile_s + jax.lax.broadcasted_iota(jnp.int32, (1, tile_s), 1)
            fold_and_accumulate(jnp.where(col < n_valid, nsim, 0.0))

    @pl.when(j == last)
    def _finish():
        # Single cross-lane (XLU) reduce per image, then the sublane sum.
        row_max = jnp.max(acc_ref[...], axis=1, keepdims=True)    # (Nt, 1)
        o_ref[0] = jnp.sum(row_max, axis=0, keepdims=True)        # (1, 1)


# ---------------------------------------------------------------------------
# Tiling / VMEM budgeting
# ---------------------------------------------------------------------------
def _vmem_limit_bytes():
    phys = 64 * 1024 * 1024                     # conservative default (v7x per-TC)
    try:
        phys = int(pltpu.get_tpu_info().vmem_capacity_bytes)
    except Exception:
        pass
    # v5e/v6e (128 MiB) -> 96 MiB; v7x (64 MiB) -> 48 MiB.
    return min(int(phys * 3 // 4), 96 * 1024 * 1024)


def _vmem_estimate(nt, k_pad, tile, feat_bytes):
    tgt = 2 * nt * max(k_pad, 128) * feat_bytes        # double-buffered target block
    tsq = 2 * nt * 128 * 4                             # (Nt,1) pads to 128 lanes
    src = 2 * _round_up(k_pad, 8) * tile * feat_bytes  # double-buffered source strip
    ssq = 2 * 8 * tile * 4
    acc = nt * 128 * 4
    slabs = 3 * nt * tile * 4                          # dist / sim / nsim working set
    return tgt + tsq + src + ssq + acc + slabs


def _pick_tile_s(nt, ns, k_pad, feat_bytes, vmem_limit):
    ns128 = _round_up(ns, 128)
    # Fewer, fatter strips amortize the ~0.35us/step overhead when Nt is small.
    tile = ((2 * 1024 * 1024) // max(nt, 1)) // 128 * 128
    tile = max(128, min(2048, tile, ns128))
    budget = int(vmem_limit * 0.7)
    while tile > 128 and _vmem_estimate(nt, k_pad, tile, feat_bytes) > budget:
        tile -= 128
    return tile


# ---------------------------------------------------------------------------
# pallas_call wrapper
# ---------------------------------------------------------------------------
def _pairwise_cx(t_feat, t_sqr, s_feat, s_sqr, inv_bandwidth, n_valid, tile_s,
                 vmem_limit):
    """t_feat (B,Nt,K), t_sqr (B,Nt,1), s_feat (B,K,Ns_pad), s_sqr (B,1,Ns_pad)
    -> (B,) per-image sums over target pixels of the max normalised similarity."""
    B, Nt, K = t_feat.shape
    _, _, Ns_pad = s_feat.shape
    num_strips = Ns_pad // tile_s
    feat_bytes = jnp.dtype(t_feat.dtype).itemsize

    kernel = functools.partial(_cx_kernel, inv_bandwidth=float(inv_bandwidth),
                               n_valid=n_valid, tile_s=tile_s)
    cost = pl.CostEstimate(
        flops=int(B * Nt * Ns_pad * (2 * K + 8)),
        transcendentals=int(B * Nt * Ns_pad),
        bytes_accessed=int(B * (feat_bytes * (Nt * K + K * Ns_pad)
                                + 4 * (Nt + Ns_pad + 1))))

    out = pl.pallas_call(
        kernel,
        out_shape=jax.ShapeDtypeStruct((B, 1, 1), jnp.float32),
        grid_spec=pltpu.PrefetchScalarGridSpec(
            num_scalar_prefetch=0,
            grid=(B, num_strips),
            in_specs=[
                # Target block index is constant in j -> fetched only at batch
                # boundaries (revisit optimization).
                pl.BlockSpec((1, Nt, K), lambda b, j: (b, 0, 0)),
                pl.BlockSpec((1, Nt, 1), lambda b, j: (b, 0, 0)),
                pl.BlockSpec((1, K, tile_s), lambda b, j: (b, 0, j)),
                pl.BlockSpec((1, 1, tile_s), lambda b, j: (b, 0, j)),
            ],
            out_specs=pl.BlockSpec((1, 1, 1), lambda b, j: (b, 0, 0)),
            scratch_shapes=[pltpu.VMEM((Nt, 128), jnp.float32)],
        ),
        compiler_params=pltpu.CompilerParams(
            dimension_semantics=("parallel", "arbitrary"),
            vmem_limit_bytes=int(vmem_limit)),
        cost_estimate=cost,
    )(t_feat, t_sqr, s_feat, s_sqr)
    return out[:, 0, 0]


# ---------------------------------------------------------------------------
# Feature preparation (wrapper side)
# ---------------------------------------------------------------------------
def _prep_target(x, k_pad, feat_dtype):
    b, c, h, w = x.shape
    n = h * w
    v = x.reshape(b, c, n).astype(jnp.float32)                   # (B, C, Nt)
    sq = jnp.sum(v * v, axis=1)[:, :, None]                      # (B, Nt, 1) f32
    t = jnp.transpose(v, (0, 2, 1)).astype(feat_dtype)           # (B, Nt, C) matmul-ready
    if k_pad != c:
        t = jnp.pad(t, ((0, 0), (0, 0), (0, k_pad - c)))
    return t, sq


def _prep_source(x, k_pad, feat_dtype, tile_s):
    b, c, h, w = x.shape
    n = h * w
    v = x.reshape(b, c, n).astype(jnp.float32)                   # (B, C, Ns) pixels on lanes
    sq = jnp.sum(v * v, axis=1, keepdims=True)                   # (B, 1, Ns) f32
    s = v.astype(feat_dtype)
    if k_pad != c:
        s = jnp.pad(s, ((0, 0), (0, k_pad - c), (0, 0)))
    n_pad = _round_up(n, tile_s)
    if n_pad != n:
        s = jnp.pad(s, ((0, 0), (0, 0), (0, n_pad - n)))
        sq = jnp.pad(sq, ((0, 0), (0, 0), (0, n_pad - n)))
    return s, sq, n


def _cx_similarity(source, target, bandwidth):
    """Per-image contextual similarity of `source` w.r.t. `target` (both NCHW). -> (B,)"""
    b, c, hs, ws = source.shape
    b2, c2, ht, wt = target.shape
    assert b == b2 and c == c2
    ns, nt = hs * ws, ht * wt
    # Per-column min/sum are over the target axis, so the whole target must stay
    # VMEM-resident; this caps the supported target spatial size (downsample first).
    assert nt <= 64 * 64, "target images larger than 64x64 pixels are not supported"

    use_bf16 = c >= 64          # realistic feature channels: MXU-bound -> bf16 contraction
    feat_dtype = jnp.bfloat16 if use_bf16 else jnp.float32
    feat_bytes = 2 if use_bf16 else 4
    k_pad = _round_up(c, 16 if use_bf16 else 8)

    vmem_limit = _vmem_limit_bytes()
    tile_s = _pick_tile_s(nt, ns, k_pad, feat_bytes, vmem_limit)

    t_feat, t_sqr = _prep_target(target, k_pad, feat_dtype)
    s_feat, s_sqr, _ = _prep_source(source, k_pad, feat_dtype, tile_s)
    n_valid = None if s_feat.shape[-1] == ns else ns

    max_sum = _pairwise_cx(t_feat, t_sqr, s_feat, s_sqr,
                           1.0 / bandwidth, n_valid, tile_s, vmem_limit)   # (B,)
    return max_sum / nt


def contextual_similarity(source, target, offset=1.0, bandwidth=0.5):
    """Equivalent of ContextualLoss.similarity (offset cancels exactly; folded away)."""
    del offset
    return _cx_similarity(source, target, bandwidth)


def contextual_loss(source, target, offset=1.0, bandwidth=0.5,
                    is_symmetric=True, is_similarity=False):
    """Equivalent of ContextualLoss.forward with sample_numel=None."""
    # TODO(synk): the sample_numel random-sampling path of the module is not replicated.
    del offset   # cancels exactly in the per-column normalisation

    if is_symmetric and source.shape == target.shape:
        # Fuse both directions into one pallas_call: parallel grid extent 2B keeps
        # both v7x TensorCores busy even for B == 1 and halves kernel launches.
        src2 = jnp.concatenate([source, target], axis=0)   # source role
        tgt2 = jnp.concatenate([target, source], axis=0)   # target role
        sims = _cx_similarity(src2, tgt2, bandwidth)        # (2B,)
        B = source.shape[0]
        sim_st, sim_ts = sims[:B], sims[B:]
        if is_similarity:
            return (sim_st + sim_ts) / 2
        return (jnp.mean(-jnp.log(sim_st)) + jnp.mean(-jnp.log(sim_ts))) / 2

    fn_sim = lambda s, t: _cx_similarity(s, t, bandwidth)
    fn = fn_sim if is_similarity else (lambda s, t: jnp.mean(-jnp.log(fn_sim(s, t))))
    out = fn(source, target)
    if is_symmetric:
        out = (out + fn(target, source)) / 2
    return out


if __name__ == "__main__":
    key = jax.random.PRNGKey(0)
    k1, k2 = jax.random.split(key)
    # small shapes consistent with the module's NCHW conv-feature inputs
    source = jax.random.normal(k1, (2, 4, 16, 16), dtype=jnp.float32)
    target = jax.random.normal(k2, (2, 4, 16, 16), dtype=jnp.float32)

    loss_fn = jax.jit(functools.partial(
        contextual_loss, offset=1.0, bandwidth=0.5,
        is_symmetric=True, is_similarity=False))

    loss = loss_fn(source, target)
    jax.block_until_ready(loss)

    # sanity: comparing an image to itself gives similarity ~1 -> loss ~0
    self_loss = loss_fn(source, source)
    jax.block_until_ready(self_loss)

    assert bool(jnp.isfinite(loss)), "loss is not finite"
    assert abs(float(self_loss)) < 1e-2, f"self-loss should be ~0, got {self_loss}"

    print("KERNEL_OK")
</pallas_src>

<mosaic_0001>
module attributes {stable_mosaic.version = 11 : i64} {
  func.func @_cx_kernel(%arg0: i32, %arg1: i32, %arg2: memref<1x256x8xf32, #tpu.memory_space<vmem>>, %arg3: memref<1x256x1xf32, #tpu.memory_space<vmem>>, %arg4: memref<1x8x256xf32, #tpu.memory_space<vmem>>, %arg5: memref<1x1x256xf32, #tpu.memory_space<vmem>>, %arg6: memref<1x1x1xf32, #tpu.memory_space<vmem>>, %arg7: memref<256x128xf32, #tpu.memory_space<vmem>>) attributes {dimension_semantics = [#tpu.dimension_semantics<parallel>, #tpu.dimension_semantics<arbitrary>], iteration_bounds = array<i64: 4, 1>, scalar_prefetch = 0 : i64, scratch_operands = 1 : i64, tpu.core_type = #tpu.core_type<tc>, window_params = [{transform_indices = @transform_0, window_bounds = array<i64: 1, 256, 8>}, {transform_indices = @transform_1, window_bounds = array<i64: 1, 256, 1>}, {transform_indices = @transform_2, window_bounds = array<i64: 1, 8, 256>}, {transform_indices = @transform_3, window_bounds = array<i64: 1, 1, 256>}, {transform_indices = @transform_4, window_bounds = array<i64: 1, 1, 1>}]} {
    %c0_i32 = arith.constant 0 : i32
    %0 = arith.cmpi eq, %arg1, %c0_i32 : i32
    %1 = arith.extui %0 : i1 to i32
    %c0_i32_0 = arith.constant 0 : i32
    %2 = arith.cmpi ne, %1, %c0_i32_0 : i32
    scf.if %2 {
      %cst_26 = arith.constant 0.000000e+00 : f32
      %46 = vector.broadcast %cst_26 : f32 to vector<256x128xf32>
      %c0_27 = arith.constant 0 : index
      %c0_28 = arith.constant 0 : index
      %47 = vector.load %arg7[%c0_27, %c0_28] : memref<256x128xf32, #tpu.memory_space<vmem>>, vector<256x128xf32>
      tpu.vector_store %arg7[%c0_27, %c0_28], %46 {strides = array<i32>} : memref<256x128xf32, #tpu.memory_space<vmem>>, vector<256x128xf32>,
    } else {
    }
    %c0 = arith.constant 0 : index
    %c0_1 = arith.constant 0 : index
    %c0_2 = arith.constant 0 : index
    %3 = vector.load %arg2[%c0, %c0_1, %c0_2] : memref<1x256x8xf32, #tpu.memory_space<vmem>>, vector<1x256x8xf32>
    %4 = vector.shape_cast %3 : vector<1x256x8xf32> to vector<256x8xf32>
    %c0_3 = arith.constant 0 : index
    %c0_4 = arith.constant 0 : index
    %c0_5 = arith.constant 0 : index
    %5 = vector.load %arg4[%c0_3, %c0_4, %c0_5] : memref<1x8x256xf32, #tpu.memory_space<vmem>>, vector<1x8x256xf32>
    %6 = vector.shape_cast %5 : vector<1x8x256xf32> to vector<8x256xf32>
    %c0_6 = arith.constant 0 : index
    %c0_7 = arith.constant 0 : index
    %c0_8 = arith.constant 0 : index
    %7 = vector.load %arg3[%c0_6, %c0_7, %c0_8] : memref<1x256x1xf32, #tpu.memory_space<vmem>>, vector<1x256x1xf32>
    %8 = vector.shape_cast %7 : vector<1x256x1xf32> to vector<256x1xf32>
    %c0_9 = arith.constant 0 : index
    %c0_10 = arith.constant 0 : index
    %c0_11 = arith.constant 0 : index
    %9 = vector.load %arg5[%c0_9, %c0_10, %c0_11] : memref<1x1x256xf32, #tpu.memory_space<vmem>>, vector<1x1x256xf32>
    %10 = vector.shape_cast %9 : vector<1x1x256xf32> to vector<1x256xf32>
    %cst = arith.constant dense<0.000000e+00> : vector<256x256xf32>
    %11 = tpu.matmul %4, %6, %cst {dimension_numbers = #tpu.dot_dimension_numbers<[1], [0], [0], [1], [0, 0, 1, 1], [], []>} : vector<256x8xf32>, vector<8x256xf32>, vector<256x256xf32> -> vector<256x256xf32>
    %cst_12 = arith.constant 2.000000e+00 : f32
    %12 = vector.broadcast %cst_12 : f32 to vector<256x256xf32>
    %13 = arith.mulf %12, %11 : vector<256x256xf32>
    %14 = vector.broadcast %8 : vector<256x1xf32> to vector<256x256xf32>
    %15 = arith.subf %14, %13 : vector<256x256xf32>
    %16 = vector.broadcast %10 : vector<1x256xf32> to vector<256x256xf32>
    %17 = arith.addf %15, %16 : vector<256x256xf32>
    %cst_13 = arith.constant 0.000000e+00 : f32
    %18 = vector.broadcast %cst_13 : f32 to vector<256x256xf32>
    %19 = arith.maximumf %17, %18 : vector<256x256xf32>
    %cst_14 = arith.constant dense<0x7F800000> : vector<256xf32>
    %20 = vector.multi_reduction <minimumf>, %19, %cst_14 [0] : vector<256x256xf32> to vector<256xf32>
    %21 = vector.shape_cast %20 : vector<256xf32> to vector<1x256xf32>
    %cst_15 = arith.constant 9.99999974E-6 : f32
    %22 = vector.broadcast %cst_15 : f32 to vector<1x256xf32>
    %23 = arith.addf %21, %22 : vector<1x256xf32>
    %cst_16 = arith.constant 2.000000e+00 : f32
    %24 = vector.broadcast %cst_16 : f32 to vector<1x256xf32>
    %25 = arith.divf %24, %23 : vector<1x256xf32>
    %cst_17 = arith.constant 0.000000e+00 : f32
    %26 = vector.broadcast %cst_17 : f32 to vector<256x256xf32>
    %27 = arith.subf %26, %19 : vector<256x256xf32>
    %28 = vector.broadcast %25 : vector<1x256xf32> to vector<256x256xf32>
    %29 = arith.mulf %27, %28 : vector<256x256xf32>
    %30 = math.exp %29 : vector<256x256xf32>
    %cst_18 = arith.constant dense<0.000000e+00> : vector<256xf32>
    %31 = vector.multi_reduction <add>, %30, %cst_18 [0] : vector<256x256xf32> to vector<256xf32>
    %32 = vector.shape_cast %31 : vector<256xf32> to vector<1x256xf32>
    %cst_19 = arith.constant 1.000000e+00 : f32
    %33 = vector.broadcast %cst_19 : f32 to vector<1x256xf32>
    %34 = arith.divf %33, %32 : vector<1x256xf32>
    %35 = vector.broadcast %34 : vector<1x256xf32> to vector<256x256xf32>
    %36 = arith.mulf %30, %35 : vector<256x256xf32>
    %37 = vector.extract_strided_slice %36 {offsets = [0, 0], sizes = [256, 128], strides = [1, 1]} : vector<256x256xf32> to vector<256x128xf32>
    %38 = vector.extract_strided_slice %36 {offsets = [0, 128], sizes = [256, 128], strides = [1, 1]} : vector<256x256xf32> to vector<256x128xf32>
    %39 = arith.maximumf %37, %38 : vector<256x128xf32>
    %c0_20 = arith.constant 0 : index
    %c0_21 = arith.constant 0 : index
    %40 = vector.load %arg7[%c0_20, %c0_21] : memref<256x128xf32, #tpu.memory_space<vmem>>, vector<256x128xf32>
    %41 = arith.maximumf %40, %39 : vector<256x128xf32>
    %c0_22 = arith.constant 0 : index
    %c0_23 = arith.constant 0 : index
    %42 = vector.load %arg7[%c0_22, %c0_23] : memref<256x128xf32, #tpu.memory_space<vmem>>, vector<256x128xf32>
    tpu.vector_store %arg7[%c0_22, %c0_23], %41 {strides = array<i32>} : memref<256x128xf32, #tpu.memory_space<vmem>>, vector<256x128xf32>,
    %c0_i32_24 = arith.constant 0 : i32
    %43 = arith.cmpi eq, %arg1, %c0_i32_24 : i32
    %44 = arith.extui %43 : i1 to i32
    %c0_i32_25 = arith.constant 0 : i32
    %45 = arith.cmpi ne, %44, %c0_i32_25 : i32
    scf.if %45 {
      %c0_26 = arith.constant 0 : index
      %c0_27 = arith.constant 0 : index
      %46 = vector.load %arg7[%c0_26, %c0_27] : memref<256x128xf32, #tpu.memory_space<vmem>>, vector<256x128xf32>
      %cst_28 = arith.constant dense<0xFF800000> : vector<256xf32>
      %47 = vector.multi_reduction <maximumf>, %46, %cst_28 [1] : vector<256x128xf32> to vector<256xf32>
      %48 = vector.shape_cast %47 : vector<256xf32> to vector<256x1xf32>
      %cst_29 = arith.constant dense<0.000000e+00> : vector<1xf32>
      %49 = vector.multi_reduction <add>, %48, %cst_29 [0] : vector<256x1xf32> to vector<1xf32>
      %50 = vector.shape_cast %49 : vector<1xf32> to vector<1x1xf32>
      %c0_30 = arith.constant 0 : index
      %c0_31 = arith.constant 0 : index
      %c0_32 = arith.constant 0 : index
      %51 = vector.load %arg6[%c0_30, %c0_31, %c0_32] : memref<1x1x1xf32, #tpu.memory_space<vmem>>, vector<1x1x1xf32>
      %52 = vector.shape_cast %51 : vector<1x1x1xf32> to vector<1x1xf32>
      %53 = vector.shape_cast %50 : vector<1x1xf32> to vector<1x1x1xf32>
      tpu.vector_store %arg6[%c0_30, %c0_31, %c0_32], %53 {strides = array<i32>} : memref<1x1x1xf32, #tpu.memory_space<vmem>>, vector<1x1x1xf32>,
    } else {
    }
    return
  }
  func.func @transform_0(%arg0: i32, %arg1: i32) -> (i32, i32, i32) {
    %c0_i32 = arith.constant 0 : i32
    %c0_i32_0 = arith.constant 0 : i32
    %c0_i32_1 = arith.constant 0 : i32
    return %arg0, %c0_i32, %c0_i32_0 : i32, i32, i32
  }
  func.func @transform_1(%arg0: i32, %arg1: i32) -> (i32, i32, i32) {
    %c0_i32 = arith.constant 0 : i32
    %c0_i32_0 = arith.constant 0 : i32
    %c0_i32_1 = arith.constant 0 : i32
    return %arg0, %c0_i32, %c0_i32_0 : i32, i32, i32
  }
  func.func @transform_2(%arg0: i32, %arg1: i32) -> (i32, i32, i32) {
    %c0_i32 = arith.constant 0 : i32
    %c0_i32_0 = arith.constant 0 : i32
    return %arg0, %c0_i32, %arg1 : i32, i32, i32
  }
  func.func @transform_3(%arg0: i32, %arg1: i32) -> (i32, i32, i32) {
    %c0_i32 = arith.constant 0 : i32
    %c0_i32_0 = arith.constant 0 : i32
    return %arg0, %c0_i32, %arg1 : i32, i32, i32
  }
  func.func @transform_4(%arg0: i32, %arg1: i32) -> (i32, i32, i32) {
    %c0_i32 = arith.constant 0 : i32
    %c0_i32_0 = arith.constant 0 : i32
    %c0_i32_1 = arith.constant 0 : i32
    return %arg0, %c0_i32, %c0_i32_0 : i32, i32, i32
  }
}

</mosaic_0001>

<bundles_post_ra>
// kernel: contextual_loss.1
= control target key start
LH: loop header
LB: loop body
LE: loop exit
PB: predicated region body
PF: predicated region fallthrough
CT: control target
= control target key end

     0   :  { %s2289_s15 = smov 0   ;;  %s2291_s16 = smov 0   ;;  %s3748_s0 = inlined_call_operand.vmem [shape: f32[4,256,8], index: 0, kind: input, shape index: {}]   ;;  %s3749_s1 = inlined_call_operand.vmem [shape: f32[4,256,1], index: 1, kind: input, shape index: {}]   ;;  %s3750_s2 = inlined_call_operand.vmem [shape: f32[4,8,256], index: 2, kind: input, shape index: {}]   ;;  %s3751_s3 = inlined_call_operand.vmem [shape: f32[4,1,256], index: 3, kind: input, shape index: {}]   ;;  %s3752_s4 = inlined_call_operand.vmem [shape: f32[4,1,1], index: 4, kind: output, shape index: {}]  }
   0x1   :  { %s2293_s17 = smov 0  }
   0x2 LB: > { %s26_s18 = sadd.s32 1, %s2256_s16  ;;  %p2027_p0 = scmp.ge.s32.totalorder %s2260_s17, 1  ;;  %s2260_s17 = sphi %s2293_s17, %s14_s17   ;;  %s2256_s16 = sphi %s2291_s16, %s4003_s16   ;;  %s2252_s15 = sphi %s2289_s15, %s4002_s15  }
   0x3   : > { %p28_p1 = scmp.ge.s32.totalorder %s26_s18, 4  ;;  %p217_p2 = scmp.lt.s32.totalorder %s2260_s17, 5 }
   0x5   : > { %s4005_s18 = smov (%p28_p1, %s26_s18), 0  ;;  %p218_p3 = pnand %p2027_p0, %p217_p2 }
   0x7   : > { %221 = sbr.rel (%p218_p3) target bundleno = 719 (0x2cf), region = 36 }
   0xe   : > { %p263_p4 = scmp.lt.s32.totalorder %s2252_s15, 3  ;;  %v2262_v0 = vmov 0.0   ;;  %v2263_v1 = vmov 0   ;;  %vm398_vm0 = vcmask 64512   ;;  %vm1921_vm1 = vcmask 0  }
   0xf   : > { %559 = vmatprep.mubr.f32.mxu0 %v2262_v0  ;;  %655 = vmatprep.mubr.f32.mxu1 %v2262_v0 }
  0x10   : > { %s4007_s15 = smov (!%p263_p4, %s2252_s15), 3  ;;  %2101 = vset.pattern.permute.xlu1 %v2263_v1  ;;  %2100 = vset.pattern.permute.xlu0 %v2263_v1 }
  0x11   : > { %s2069_s19 = sshll.u32 %s4007_s15, 8  ;;  %s2071_s20 = sshll.u32 %s4007_s15, 4 }
  0x12   : > { %s2316_s23 = scalar_lea.vmem %s3748_s0, %s2069_s19  ;;  %s281_s26 = scalar_lea.vmem %s3750_s2, %s2071_s20 }
  0x13   : > { %v331_v2 = vld [vmem:[%s2316_s23] sm:$0xff]  ;;  %v364_v3 = vld [vmem:[%s281_s26 + $0x8] sm:$0xff]  ;;  %s2328_s29 = scalar_lea.vmem %s3749_s1, %s2069_s19  ;;  %v333_v10 = vld [vmem:[%s2316_s23 + $0x10] sm:$0xff]  ;;  %s2034_s30 = sshll.u32 %s4007_s15, 1 }
  0x14   : > { %v363_v4 = vld [vmem:[%s281_s26] sm:$0xff]  ;;  %495 = vmatprep.subr.mxu0 %v364_v3  ;;  %2072 = vmatprep.subr.mxu1 %v364_v3  ;;  %v332_v6 = vld [vmem:[%s2316_s23 + $0x8] sm:$0xff]  ;;  %v367_v8 = vld [vmem:[%s2328_s29 + $0x10] sm:$0xff]  ;;  %s290_s7 = scalar_lea.vmem %s3751_s3, %s2034_s30  ;;  %s294_s10 = scalar_lea.vmem %s3752_s4, %s4007_s15 }
  0x15   : > { %v347_v5 = vld [vmem:[%s2316_s23 + $0x80] sm:$0xff]  ;;  %496 = vmatpush1.msra.mxu0 %v363_v4  ;;  %2073 = vmatpush1.msra.mxu1 %v363_v4  ;;  %v348_v7 = vld [vmem:[%s2316_s23 + $0x88] sm:$0xff]  ;;  %v349_v11 = vld [vmem:[%s2316_s23 + $0x90] sm:$0xff] }
  0x16   : > { %2035 = vmatmul.mubr.msk.f32.vlgmr.msra.gmra.mrb[0].mxu0 %vm398_vm0, %v331_v2  ;;  %2051 = vmatmul.mubr.msk.f32.vlgmr.msra.gmra.mrb[0].mxu1 %vm398_vm0, %v347_v5  ;;  %v365_v9 = vld [vmem:[%s2328_s29] sm:$0xff]  ;;  %v368_v12 = vld [vmem:[%s2328_s29 + $0x18] sm:$0xff]  ;;  %v366_v13 = vld [vmem:[%s2328_s29 + $0x8] sm:$0xff] }
  0x17   : > { %565 = vmatprep.mubr.f32.mxu0 %v2262_v0  ;;  %661 = vmatprep.mubr.f32.mxu1 %v2262_v0  ;;  %v334_v14 = vld [vmem:[%s2316_s23 + $0x18] sm:$0xff]  ;;  %v370_v16 = vld [vmem:[%s2328_s29 + $0x28] sm:$0xff]  ;;  %v369_v17 = vld [vmem:[%s2328_s29 + $0x20] sm:$0xff] }
  0x18   : > { %828 = vperm.xlu1 %2101, %v367_v8   ;;  %818 = vperm.xlu0 %2100, %v365_v9   ;;  %v350_v15 = vld [vmem:[%s2316_s23 + $0x98] sm:$0xff]  ;;  %v335_v18 = vld [vmem:[%s2316_s23 + $0x20] sm:$0xff]  ;;  %v371_v21 = vld [vmem:[%s2328_s29 + $0x30] sm:$0xff] }
  0x19   : > { %v351_v19 = vld [vmem:[%s2316_s23 + $0xa0] sm:$0xff]  ;;  %v372_v20 = vld [vmem:[%s2328_s29 + $0x38] sm:$0xff]  ;;  %v336_v22 = vld [vmem:[%s2316_s23 + $0x28] sm:$0xff] }
  0x1a   : > { %2036 = vmatmul.mubr.msk.f32.gmra.mrb[2].mxu0 %vm398_vm0, %v332_v6  ;;  %2052 = vmatmul.mubr.msk.f32.gmra.mrb[2].mxu1 %vm398_vm0, %v348_v7  ;;  %v352_v23 = vld [vmem:[%s2316_s23 + $0xa8] sm:$0xff]  ;;  %v373_v25 = vld [vmem:[%s2328_s29 + $0x40] sm:$0xff]  ;;  %v337_v26 = vld [vmem:[%s2316_s23 + $0x30] sm:$0xff] }
  0x1b   : > { %571 = vmatprep.mubr.f32.mxu0 %v2262_v0  ;;  %667 = vmatprep.mubr.f32.mxu1 %v2262_v0  ;;  %v374_v24 = vld [vmem:[%s2328_s29 + $0x48] sm:$0xff]  ;;  %v353_v27 = vld [vmem:[%s2316_s23 + $0xb0] sm:$0xff]  ;;  %v376_v28 = vld [vmem:[%s2328_s29 + $0x58] sm:$0xff] }
  0x1c   : > { %833 = vperm.xlu1 %2101, %v368_v12   ;;  %823 = vperm.xlu0 %2100, %v366_v13   ;;  %v375_v29 = vld [vmem:[%s2328_s29 + $0x50] sm:$0xff]  ;;  %v338_v30 = vld [vmem:[%s2316_s23 + $0x38] sm:$0xff]  ;;  %v378_v32 = vld [vmem:[%s2328_s29 + $0x68] sm:$0xff] }
  0x1d   : > { %v354_v31 = vld [vmem:[%s2316_s23 + $0xb8] sm:$0xff]  ;;  %v377_v33 = vld [vmem:[%s2328_s29 + $0x60] sm:$0xff]  ;;  %v379_v37 = vld [vmem:[%s2328_s29 + $0x70] sm:$0xff] }
  0x1e   : > { %2037 = vmatmul.mubr.msk.f32.gmra.mrb[4].mxu0 %vm398_vm0, %v333_v10  ;;  %2053 = vmatmul.mubr.msk.f32.gmra.mrb[4].mxu1 %vm398_vm0, %v349_v11  ;;  %v339_v34 = vld [vmem:[%s2316_s23 + $0x40] sm:$0xff]  ;;  %v380_v36 = vld [vmem:[%s2328_s29 + $0x78] sm:$0xff]  ;;  %v340_v38 = vld [vmem:[%s2316_s23 + $0x48] sm:$0xff] }
  0x1f   : > { %577 = vmatprep.mubr.f32.mxu0 %v2262_v0  ;;  %673 = vmatprep.mubr.f32.mxu1 %v2262_v0  ;;  %v355_v35 = vld [vmem:[%s2316_s23 + $0xc0] sm:$0xff]  ;;  %v356_v39 = vld [vmem:[%s2316_s23 + $0xc8] sm:$0xff]  ;;  %v341_v42 = vld [vmem:[%s2316_s23 + $0x50] sm:$0xff] }
  0x20   : > { %843 = vperm.xlu1 %2101, %v370_v16   ;;  %838 = vperm.xlu0 %2100, %v369_v17   ;;  %v382_v40 = vld [vmem:[%s2328_s29 + $0x88] sm:$0xff]  ;;  %v381_v41 = vld [vmem:[%s2328_s29 + $0x80] sm:$0xff]  ;;  %v357_v43 = vld [vmem:[%s2316_s23 + $0xd0] sm:$0xff]  ;;  %v1041_v16 = vlaneseq }
  0x21   : > { %v384_v44 = vld [vmem:[%s2328_s29 + $0x98] sm:$0xff]  ;;  %v383_v45 = vld [vmem:[%s2328_s29 + $0x90] sm:$0xff]  ;;  %v386_v48 = vld [vmem:[%s2328_s29 + $0xa8] sm:$0xff] }
  0x22   : > { %2038 = vmatmul.mubr.msk.f32.gmra.mrb[6].mxu0 %vm398_vm0, %v334_v14  ;;  %2054 = vmatmul.mubr.msk.f32.gmra.mrb[6].mxu1 %vm398_vm0, %v350_v15  ;;  %v342_v46 = vld [vmem:[%s2316_s23 + $0x58] sm:$0xff]  ;;  %v385_v49 = vld [vmem:[%s2328_s29 + $0xa0] sm:$0xff]  ;;  %v387_v53 = vld [vmem:[%s2328_s29 + $0xb0] sm:$0xff] }
  0x23   : > { %583 = vmatprep.mubr.f32.mxu0 %v2262_v0  ;;  %679 = vmatprep.mubr.f32.mxu1 %v2262_v0  ;;  %v358_v47 = vld [vmem:[%s2316_s23 + $0xd8] sm:$0xff]  ;;  %v343_v50 = vld [vmem:[%s2316_s23 + $0x60] sm:$0xff]  ;;  %v344_v54 = vld [vmem:[%s2316_s23 + $0x68] sm:$0xff] }
  0x24   : > { %853 = vperm.xlu1 %2101, %v372_v20   ;;  %848 = vperm.xlu0 %2100, %v371_v21   ;;  %v359_v51 = vld [vmem:[%s2316_s23 + $0xe0] sm:$0xff]  ;;  %v388_v52 = vld [vmem:[%s2328_s29 + $0xb8] sm:$0xff]  ;;  %v360_v55 = vld [vmem:[%s2316_s23 + $0xe8] sm:$0xff] }
  0x25   : > { %v390_v56 = vld [vmem:[%s2328_s29 + $0xc8] sm:$0xff]  ;;  %v389_v57 = vld [vmem:[%s2328_s29 + $0xc0] sm:$0xff]  ;;  %v345_v58 = vld [vmem:[%s2316_s23 + $0x70] sm:$0xff] }
  0x26   : > { %2039 = vmatmul.mubr.msk.f32.gmra.mrb[8].mxu0 %vm398_vm0, %v335_v18  ;;  %2055 = vmatmul.mubr.msk.f32.gmra.mrb[8].mxu1 %vm398_vm0, %v351_v19  ;;  %v361_v59 = vld [vmem:[%s2316_s23 + $0xf0] sm:$0xff]  ;;  %v392_v60 = vld [vmem:[%s2328_s29 + $0xd8] sm:$0xff]  ;;  %v394_v1 = vld [vmem:[%s2328_s29 + $0xe8] sm:$0xff]  ;;  %v1042_v19 = vshrl.u32 %v1041_v16, 7 }
  0x27   : > { %589 = vmatprep.mubr.f32.mxu0 %v2262_v0  ;;  %685 = vmatprep.mubr.f32.mxu1 %v2262_v0  ;;  %v391_v61 = vld [vmem:[%s2328_s29 + $0xd0] sm:$0xff]  ;;  %v346_v62 = vld [vmem:[%s2316_s23 + $0x78] sm:$0xff]  ;;  %v393_v2 = vld [vmem:[%s2328_s29 + $0xe0] sm:$0xff] }
  0x28   : > { %863 = vperm.xlu1 %2101, %v374_v24   ;;  %858 = vperm.xlu0 %2100, %v373_v25   ;;  %v362_v63 = vld [vmem:[%s2316_s23 + $0xf8] sm:$0xff]  ;;  %v395_v4 = vld [vmem:[%s2328_s29 + $0xf0] sm:$0xff]  ;;  %v1043_v21 = vsub.s32 0, %v1042_v19 }
  0x29   : > { %v396_v3 = vld [vmem:[%s2328_s29 + $0xf8] sm:$0xff] }
  0x2a   : > { %2040 = vmatmul.mubr.msk.f32.gmra.mrb[10].mxu0 %vm398_vm0, %v336_v22  ;;  %2056 = vmatmul.mubr.msk.f32.gmra.mrb[10].mxu1 %vm398_vm0, %v352_v23  ;;  %v397_v23 = vld [vmem:[%s290_s7] sm:$0x3] }
  0x2b   : > { %595 = vmatprep.mubr.f32.mxu0 %v2262_v0  ;;  %691 = vmatprep.mubr.f32.mxu1 %v2262_v0 }
  0x2c   : > { %873 = vperm.xlu1 %2101, %v376_v28   ;;  %868 = vperm.xlu0 %2100, %v375_v29  }
  0x2e   : > { %2041 = vmatmul.mubr.msk.f32.gmra.mrb[12].mxu0 %vm398_vm0, %v337_v26  ;;  %2057 = vmatmul.mubr.msk.f32.gmra.mrb[12].mxu1 %vm398_vm0, %v353_v27  ;;  %v1047_v26 = vsub.s32 1, %v1042_v19 }
  0x2f   : > { %601 = vmatprep.mubr.f32.mxu0 %v2262_v0  ;;  %697 = vmatprep.mubr.f32.mxu1 %v2262_v0 }
  0x30   : > { %883 = vperm.xlu1 %2101, %v378_v32   ;;  %878 = vperm.xlu0 %2100, %v377_v33   ;;  %v2486_v32 = vrot.slane %v397_v23, %v1043_v21 }
  0x32   : > { %2042 = vmatmul.mubr.msk.f32.gmra.mrb[14].mxu0 %vm398_vm0, %v338_v30  ;;  %2058 = vmatmul.mubr.msk.f32.gmra.mrb[14].mxu1 %vm398_vm0, %v354_v31 }
  0x33   : > { %607 = vmatprep.mubr.f32.mxu0 %v2262_v0  ;;  %703 = vmatprep.mubr.f32.mxu1 %v2262_v0 }
  0x34   : > { %893 = vperm.xlu1 %2101, %v380_v36   ;;  %888 = vperm.xlu0 %2100, %v379_v37  }
  0x36   : > { %2043 = vmatmul.mubr.msk.f32.gmra.mrb[16].mxu0 %vm398_vm0, %v339_v34  ;;  %2059 = vmatmul.mubr.msk.f32.gmra.mrb[16].mxu1 %vm398_vm0, %v355_v35 }
  0x37   : > { %613 = vmatprep.mubr.f32.mxu0 %v2262_v0  ;;  %709 = vmatprep.mubr.f32.mxu1 %v2262_v0 }
  0x38   : > { %903 = vperm.xlu1 %2101, %v382_v40   ;;  %898 = vperm.xlu0 %2100, %v381_v41  }
  0x3a   : > { %2044 = vmatmul.mubr.msk.f32.gmra.mrb[18].mxu0 %vm398_vm0, %v340_v38  ;;  %2060 = vmatmul.mubr.msk.f32.gmra.mrb[18].mxu1 %vm398_vm0, %v356_v39  ;;  %v2488_v38 = vrot.slane %v397_v23, %v1047_v26 }
  0x3b   : > { %619 = vmatprep.mubr.f32.mxu0 %v2262_v0  ;;  %715 = vmatprep.mubr.f32.mxu1 %v2262_v0 }
  0x3c   : > { %913 = vperm.xlu1 %2101, %v384_v44   ;;  %908 = vperm.xlu0 %2100, %v383_v45  }
  0x3e   : > { %2045 = vmatmul.mubr.msk.f32.gmra.mrb[20].mxu0 %vm398_vm0, %v341_v42  ;;  %2061 = vmatmul.mubr.msk.f32.gmra.mrb[20].mxu1 %vm398_vm0, %v357_v43 }
  0x3f   : > { %625 = vmatprep.mubr.f32.mxu0 %v2262_v0  ;;  %721 = vmatprep.mubr.f32.mxu1 %v2262_v0 }
  0x40   : > { %923 = vperm.xlu1 %2101, %v386_v48   ;;  %918 = vperm.xlu0 %2100, %v385_v49  }
  0x42   : > { %2046 = vmatmul.mubr.msk.f32.gmra.mrb[22].mxu0 %vm398_vm0, %v342_v46  ;;  %2062 = vmatmul.mubr.msk.f32.gmra.mrb[22].mxu1 %vm398_vm0, %v358_v47 }
  0x43   : > { %631 = vmatprep.mubr.f32.mxu0 %v2262_v0  ;;  %727 = vmatprep.mubr.f32.mxu1 %v2262_v0 }
  0x44   : > { %933 = vperm.xlu1 %2101, %v388_v52   ;;  %928 = vperm.xlu0 %2100, %v387_v53  }
  0x46   : > { %2047 = vmatmul.mubr.msk.f32.gmra.mrb[24].mxu0 %vm398_vm0, %v343_v50  ;;  %2063 = vmatmul.mubr.msk.f32.gmra.mrb[24].mxu1 %vm398_vm0, %v359_v51 }
  0x47   : > { %637 = vmatprep.mubr.f32.mxu0 %v2262_v0  ;;  %733 = vmatprep.mubr.f32.mxu1 %v2262_v0 }
  0x48   : > { %943 = vperm.xlu1 %2101, %v390_v56   ;;  %938 = vperm.xlu0 %2100, %v389_v57  }
  0x4a   : > { %2048 = vmatmul.mubr.msk.f32.gmra.mrb[26].mxu0 %vm398_vm0, %v344_v54  ;;  %2064 = vmatmul.mubr.msk.f32.gmra.mrb[26].mxu1 %vm398_vm0, %v360_v55 }
  0x4b   : > { %643 = vmatprep.mubr.f32.mxu0 %v2262_v0  ;;  %739 = vmatprep.mubr.f32.mxu1 %v2262_v0 }
  0x4c   : > { %953 = vperm.xlu1 %2101, %v392_v60   ;;  %948 = vperm.xlu0 %2100, %v391_v61  }
  0x4e   : > { %2049 = vmatmul.mubr.msk.f32.gmra.mrb[28].mxu0 %vm398_vm0, %v345_v58  ;;  %2065 = vmatmul.mubr.msk.f32.gmra.mrb[28].mxu1 %vm398_vm0, %v361_v59 }
  0x4f   : > { %649 = vmatprep.mubr.f32.mxu0 %v2262_v0  ;;  %745 = vmatprep.mubr.f32.mxu1 %v2262_v0 }
  0x50   : > { %963 = vperm.xlu1 %2101, %v394_v1   ;;  %958 = vperm.xlu0 %2100, %v393_v2  }
  0x52   : > { %2050 = vmatmul.mubr.msk.f32.gmra.mrb[30].mxu0 %vm398_vm0, %v346_v62  ;;  %2066 = vmatmul.mubr.msk.f32.gmra.mrb[30].mxu1 %vm398_vm0, %v362_v63 }
  0x54   : > { %973 = vperm.xlu1 %2101, %v396_v3   ;;  %968 = vperm.xlu0 %2100, %v395_v4  }
  0x97   : > { %v819_v5 = vpop.permute.xlu0 %818  ;;  %v2452_v6 = vpop.permute.xlu1 %828 }
  0x9b   : > { %v2454_v0 = vpop.permute.xlu0 %823  ;;  %v2456_v7 = vpop.permute.xlu1 %833 }
  0x9f   : > { %v2458_v8 = vpop.permute.xlu0 %838  ;;  %v2460_v9 = vpop.permute.xlu1 %843 }
  0xa3   : > { %v2462_v10 = vpop.permute.xlu0 %848  ;;  %v2464_v11 = vpop.permute.xlu1 %853 }
  0xa7   : > { %v2466_v12 = vpop.permute.xlu0 %858  ;;  %v2468_v13 = vpop.permute.xlu1 %863 }
  0xab   : > { %v2470_v14 = vpop.permute.xlu0 %868  ;;  %v2472_v15 = vpop.permute.xlu1 %873 }
  0xaf   : > { %v2474_v17 = vpop.permute.xlu0 %878  ;;  %v2476_v18 = vpop.permute.xlu1 %883 }
  0xb3   : > { %v2482_v20 = vpop.permute.xlu0 %888  ;;  %v2484_v22 = vpop.permute.xlu1 %893 }
  0xb7   : > { %v899_v33 = vpop.permute.xlu0 %898  ;;  %v904_v45 = vpop.permute.xlu1 %903 }
  0xbb   : > { %v909_v60 = vpop.permute.xlu0 %908 }
  0xe9   : > { %v561_v24 = vpop.f32.mrb[0].mxu0  ;;  %v657_v25 = vpop.f32.mrb[0].mxu1 }
  0xea   : > { %v752_v27 = vmul.f32 2.0, %v561_v24  ;;  %v563_v28 = vpop.f32.mrb[1].mxu0  ;;  %v784_v29 = vmul.f32 2.0, %v657_v25  ;;  %v659_v30 = vpop.f32.mrb[1].mxu1 }
  0xeb   : > { %v753_v31 = vmul.f32 2.0, %v563_v28  ;;  %v785_v35 = vmul.f32 2.0, %v659_v30 }
  0xec   : > { %v976_v34 = vsub.f32 %v819_v5, %v752_v27  ;;  %v1008_v42 = vsub.f32 %v899_v33, %v784_v29 }
  0xed   : > { %v567_v36 = vpop.f32.mrb[2].mxu0  ;;  %v663_v37 = vpop.f32.mrb[2].mxu1  ;;  %v977_v39 = vsub.f32 %v819_v5, %v753_v31  ;;  %v1009_v48 = vsub.f32 %v899_v33, %v785_v35 }
  0xee   : > { %v754_v40 = vmul.f32 2.0, %v567_v36  ;;  %v569_v41 = vpop.f32.mrb[3].mxu0  ;;  %v665_v43 = vpop.f32.mrb[3].mxu1  ;;  %v786_v44 = vmul.f32 2.0, %v663_v37  ;;  %v2491_v46 = vadd.f32 %v2486_v32, %v976_v34  ;;  %v2498_v55 = vadd.f32 %v2486_v32, %v1008_v42 }
  0xef   : > { %v755_v47 = vmul.f32 2.0, %v569_v41  ;;  %v787_v50 = vmul.f32 2.0, %v665_v43  ;;  %v2494_v52 = vadd.f32 %v2488_v38, %v977_v39  ;;  %v2504_v1 = vadd.f32 %v2488_v38, %v1009_v48 }
  0xf0   : > { %v978_v53 = vsub.f32 %v2454_v0, %v754_v40  ;;  %v1010_v59 = vsub.f32 %v904_v45, %v786_v44  ;;  %v3770_v61 = vmax.f32 %v2491_v46, 0.0 }
  0xf1   : > { %v573_v49 = vpop.f32.mrb[4].mxu0  ;;  %v669_v51 = vpop.f32.mrb[4].mxu1  ;;  %3845 = vst [vmem:[#allocation3_spill] sm:$0xff] %v2494_v52  ;;  %v979_v62 = vsub.f32 %v2454_v0, %v755_v47  ;;  %3846 = vst [vmem:[#allocation4_spill] sm:$0xff] %v2504_v1  ;;  %v1011_v3 = vsub.f32 %v904_v45, %v787_v50  ;;  %v3756_v21 = vmax.f32 %v2494_v52, 0.0  ;;  %v3767_v0 = vmax.f32 %v2498_v55, 0.0 }
  0xf2   : > { %v756_v54 = vmul.f32 2.0, %v573_v49  ;;  %v575_v56 = vpop.f32.mrb[5].mxu0  ;;  %v671_v57 = vpop.f32.mrb[5].mxu1  ;;  %v788_v5 = vmul.f32 2.0, %v669_v51  ;;  %v2509_v23 = vadd.f32 %v2486_v32, %v978_v53  ;;  %v3755_v33 = vmax.f32 %v2504_v1, 0.0 }
  0xf3   : > { %v757_v58 = vmul.f32 2.0, %v575_v56  ;;  %v789_v16 = vmul.f32 2.0, %v671_v57  ;;  %v2522_v30 = vadd.f32 %v2488_v38, %v979_v62  ;;  %v2528_v36 = vadd.f32 %v2488_v38, %v1011_v3  ;;  %v914_v49 = vpop.permute.xlu1 %913 }
  0xf4   : > { %v980_v63 = vsub.f32 %v2452_v6, %v756_v54  ;;  %v1012_v29 = vsub.f32 %v909_v60, %v788_v5  ;;  %v3769_v42 = vmax.f32 %v2509_v23, 0.0 }
  0xf5   : > { %v981_v2 = vsub.f32 %v2452_v6, %v757_v58  ;;  %v579_v4 = vpop.f32.mrb[6].mxu0  ;;  %v675_v19 = vpop.f32.mrb[6].mxu1  ;;  %v2519_v6 = vadd.f32 %v2486_v32, %v1010_v59  ;;  %3848 = vst [vmem:[#allocation6_spill] sm:$0xff] %v2522_v30  ;;  %3849 = vst [vmem:[#allocation7_spill] sm:$0xff] %v2528_v36  ;;  %v1013_v39 = vsub.f32 %v909_v60, %v789_v16  ;;  %v3754_v60 = vmax.f32 %v2528_v36, 0.0 }
  0xf6   : > { %v2512_v24 = vadd.f32 %v2486_v32, %v980_v63  ;;  %v581_v25 = vpop.f32.mrb[7].mxu0  ;;  %v677_v26 = vpop.f32.mrb[7].mxu1  ;;  %v758_v28 = vmul.f32 2.0, %v579_v4  ;;  %v790_v45 = vmul.f32 2.0, %v675_v19  ;;  %v2546_v54 = vadd.f32 %v2486_v32, %v1012_v29 }
  0xf7   : > { %v2516_v27 = vadd.f32 %v2488_v38, %v981_v2  ;;  %v759_v34 = vmul.f32 2.0, %v581_v25  ;;  %v3764_v51 = vmax.f32 %v2519_v6, 0.0  ;;  %v2554_v57 = vadd.f32 %v2488_v38, %v1013_v39 }
  0xf8   : > { %v3766_v31 = vmax.f32 %v2512_v24, 0.0  ;;  %v982_v37 = vsub.f32 %v2456_v7, %v758_v28  ;;  %v1014_v58 = vsub.f32 %v914_v49, %v790_v45  ;;  %v791_v63 = vmul.f32 2.0, %v677_v26 }
  0xf9   : > { %3847 = vst [vmem:[#allocation5_spill] sm:$0xff] %v2516_v27  ;;  %v3753_v35 = vmax.f32 %v2516_v27, 0.0  ;;  %v585_v40 = vpop.f32.mrb[8].mxu0  ;;  %v681_v41 = vpop.f32.mrb[8].mxu1  ;;  %v983_v44 = vsub.f32 %v2456_v7, %v759_v34  ;;  %3851 = vst [vmem:[#allocation9_spill] sm:$0xff] %v2554_v57  ;;  %v3759_v4 = vmax.f32 %v2522_v30, 0.0 }
  0xfa   : > { %v1179_v43 = vmin.f32 %v3770_v61, %v3766_v31  ;;  %v587_v47 = vpop.f32.mrb[9].mxu0  ;;  %v683_v48 = vpop.f32.mrb[9].mxu1  ;;  %v2543_v53 = vadd.f32 %v2486_v32, %v982_v37  ;;  %v2565_v19 = vadd.f32 %v2486_v32, %v1014_v58  ;;  %v1015_v34 = vsub.f32 %v914_v49, %v791_v63 }
  0xfb   : > { %v1216_v50 = vmin.f32 %v3756_v21, %v3753_v35  ;;  %v2551_v56 = vadd.f32 %v2488_v38, %v983_v44  ;;  %v919_v37 = vpop.permute.xlu0 %918  ;;  %v3760_v39 = vmax.f32 %v2546_v54, 0.0  ;;  %v3762_v44 = vmax.f32 %v2554_v57, 0.0 }
  0xfc   : > { %v1181_v7 = vmin.f32 %v1179_v43, %v3767_v0  ;;  %v3757_v62 = vmax.f32 %v2543_v53, 0.0  ;;  %v792_v58 = vmul.f32 2.0, %v681_v41  ;;  %v3763_v49 = vmax.f32 %v2565_v19, 0.0 }
  0xfd   : > { %3850 = vst [vmem:[#allocation8_spill] sm:$0xff] %v2551_v56  ;;  %v1218_v59 = vmin.f32 %v1216_v50, %v3755_v33  ;;  %v591_v2 = vpop.f32.mrb[10].mxu0  ;;  %v687_v3 = vpop.f32.mrb[10].mxu1  ;;  %v3758_v16 = vmax.f32 %v2551_v56, 0.0  ;;  %v2580_v50 = vadd.f32 %v2488_v38, %v1015_v34  ;;  %v761_v63 = vmul.f32 2.0, %v587_v47 }
  0xfe   : > { %v1182_v5 = vmin.f32 %v3764_v51, %v1181_v7  ;;  %v593_v25 = vpop.f32.mrb[11].mxu0  ;;  %v689_v28 = vpop.f32.mrb[11].mxu1  ;;  %v1180_v26 = vmin.f32 %v3769_v42, %v3757_v62  ;;  %v760_v7 = vmul.f32 2.0, %v585_v40  ;;  %v793_v33 = vmul.f32 2.0, %v683_v48 }
  0xff   : > { %v1219_v29 = vmin.f32 %v3754_v60, %v1218_v59  ;;  %v1217_v43 = vmin.f32 %v3759_v4, %v3758_v16  ;;  %3852 = vst [vmem:[#allocation10_spill] sm:$0xff] %v2580_v50  ;;  %v3761_v4 = vmax.f32 %v2580_v50, 0.0  ;;  %v985_v41 = vsub.f32 %v2458_v8, %v761_v63  ;;  %v929_v0 = vpop.permute.xlu0 %928 }
 0x100   : > { %v1183_v45 = vmin.f32 %v1180_v26, %v1182_v5  ;;  %v984_v5 = vsub.f32 %v2458_v8, %v760_v7  ;;  %v1016_v26 = vsub.f32 %v919_v37, %v792_v58  ;;  %v762_v34 = vmul.f32 2.0, %v591_v2 }
 0x101   : > { %v597_v59 = vpop.f32.mrb[12].mxu0  ;;  %v693_v35 = vpop.f32.mrb[12].mxu1  ;;  %v1220_v60 = vmin.f32 %v1217_v43, %v1219_v29  ;;  %v1017_v29 = vsub.f32 %v919_v37, %v793_v33  ;;  %v794_v58 = vmul.f32 2.0, %v687_v3  ;;  %v763_v63 = vmul.f32 2.0, %v593_v25 }
 0x102   : > { %v599_v21 = vpop.f32.mrb[13].mxu0  ;;  %v695_v62 = vpop.f32.mrb[13].mxu1  ;;  %v1184_v16 = vmin.f32 %v3760_v39, %v1183_v45  ;;  %v2593_v48 = vadd.f32 %v2486_v32, %v984_v5  ;;  %v2596_v43 = vadd.f32 %v2486_v32, %v1016_v26  ;;  %v986_v33 = vsub.f32 %v2460_v9, %v762_v34 }
 0x103   : > { %v1221_v40 = vmin.f32 %v3762_v44, %v1220_v60  ;;  %v2601_v60 = vadd.f32 %v2488_v38, %v985_v41  ;;  %v2604_v8 = vadd.f32 %v2488_v38, %v1017_v29  ;;  %v924_v5 = vpop.permute.xlu1 %923  ;;  %v795_v41 = vmul.f32 2.0, %v689_v28 }
 0x104   : > { %v1185_v47 = vmin.f32 %v3763_v49, %v1184_v16  ;;  %v3765_v37 = vmax.f32 %v2593_v48, 0.0  ;;  %v1018_v34 = vsub.f32 %v924_v5, %v794_v58  ;;  %v796_v42 = vmul.f32 2.0, %v693_v35 }
 0x105   : > { %v603_v45 = vpop.f32.mrb[14].mxu0  ;;  %v699_v39 = vpop.f32.mrb[14].mxu1  ;;  %v1222_v7 = vmin.f32 %v3761_v4, %v1221_v40  ;;  %3853 = vst [vmem:[#allocation11_spill] sm:$0xff] %v2601_v60  ;;  %3854 = vst [vmem:[#allocation12_spill] sm:$0xff] %v2604_v8  ;;  %v3768_v26 = vmax.f32 %v2601_v60, 0.0  ;;  %v2612_v40 = vadd.f32 %v2486_v32, %v986_v33  ;;  %v3775_v4 = vmax.f32 %v2596_v43, 0.0 }
 0x106   : > { %v605_v2 = vpop.f32.mrb[15].mxu0  ;;  %v2607_v16 = vpop.f32.mrb[15].mxu1  ;;  %v1186_v29 = vmin.f32 %v3765_v37, %v1185_v47  ;;  %v3773_v25 = vmax.f32 %v2604_v8, 0.0  ;;  %v2632_v58 = vadd.f32 %v2486_v32, %v1018_v34  ;;  %v987_v37 = vsub.f32 %v2460_v9, %v763_v63 }
 0x107   : > { %v1223_v3 = vmin.f32 %v3768_v26, %v1222_v7  ;;  %v3774_v51 = vmax.f32 %v2612_v40, 0.0  ;;  %v1019_v31 = vsub.f32 %v924_v5, %v795_v41  ;;  %v764_v26 = vmul.f32 2.0, %v597_v59 }
 0x108   : > { %v1187_v47 = vmin.f32 %v3775_v4, %v1186_v29  ;;  %v3776_v60 = vmax.f32 %v2632_v58, 0.0  ;;  %v2641_v50 = vadd.f32 %v2488_v38, %v987_v37  ;;  %v1020_v5 = vsub.f32 %v929_v0, %v796_v42 }
 0x109   : > { %v2617_v44 = vpop.f32.mrb[16].mxu0  ;;  %v2619_v49 = vpop.f32.mrb[16].mxu1  ;;  %v1224_v7 = vmin.f32 %v3773_v25, %v1223_v3  ;;  %v2644_v29 = vadd.f32 %v2488_v38, %v1019_v31  ;;  %v988_v63 = vsub.f32 %v2462_v10, %v764_v26  ;;  %v765_v59 = vmul.f32 2.0, %v599_v21 }
 0x10a   : > { %v2625_v33 = vpop.f32.mrb[17].mxu0  ;;  %v2627_v28 = vpop.f32.mrb[17].mxu1  ;;  %v1188_v61 = vmin.f32 %v3774_v51, %v1187_v47  ;;  %3855 = vst [vmem:[#allocation13_spill] sm:$0xff] %v2641_v50  ;;  %v797_v35 = vmul.f32 2.0, %v695_v62  ;;  %v3777_v47 = vmax.f32 %v2641_v50, 0.0  ;;  %v2662_v25 = vadd.f32 %v2486_v32, %v1020_v5 }
 0x10b   : > { %3856 = vst [vmem:[#allocation14_spill] sm:$0xff] %v2644_v29  ;;  %v2659_v31 = vadd.f32 %v2486_v32, %v988_v63  ;;  %v989_v26 = vsub.f32 %v2462_v10, %v765_v59  ;;  %v3783_v62 = vmax.f32 %v2644_v29, 0.0  ;;  %v766_v51 = vmul.f32 2.0, %v603_v45 }
 0x10c   : > { %v1189_v37 = vmin.f32 %v3776_v60, %v1188_v61  ;;  %v1021_v42 = vsub.f32 %v929_v0, %v797_v35  ;;  %v1225_v21 = vmin.f32 %v3777_v47, %v1224_v7  ;;  %v798_v59 = vmul.f32 2.0, %v699_v39  ;;  %v934_v47 = vpop.permute.xlu1 %933 }
 0x10d   : > { %v2646_v34 = vpop.f32.mrb[18].mxu0  ;;  %v2648_v9 = vpop.f32.mrb[18].mxu1  ;;  %v3786_v60 = vmax.f32 %v2659_v31, 0.0  ;;  %v2674_v63 = vadd.f32 %v2488_v38, %v989_v26  ;;  %v990_v45 = vsub.f32 %v2464_v11, %v766_v51  ;;  %v767_v35 = vmul.f32 2.0, %v605_v2 }
 0x10e   : > { %v2651_v41 = vpop.f32.mrb[19].mxu0  ;;  %v2653_v3 = vpop.f32.mrb[19].mxu1  ;;  %v2677_v5 = vadd.f32 %v2488_v38, %v1021_v42  ;;  %v1226_v7 = vmin.f32 %v3783_v62, %v1225_v21  ;;  %v3785_v26 = vmax.f32 %v2662_v25, 0.0  ;;  %v1022_v57 = vsub.f32 %v934_v47, %v798_v59 }
 0x10f   : > { %3857 = vst [vmem:[#allocation15_spill] sm:$0xff] %v2674_v63  ;;  %v1190_v50 = vmin.f32 %v3786_v60, %v1189_v37  ;;  %v3784_v42 = vmax.f32 %v2674_v63, 0.0  ;;  %v2691_v8 = vadd.f32 %v2486_v32, %v990_v45  ;;  %v991_v56 = vsub.f32 %v2464_v11, %v767_v35 }
 0x110   : > { %3858 = vst [vmem:[#allocation16_spill] sm:$0xff] %v2677_v5  ;;  %v3790_v2 = vmax.f32 %v2677_v5, 0.0  ;;  %v799_v37 = vmul.f32 2.0, %v2607_v16  ;;  %v2710_v59 = vadd.f32 %v2486_v32, %v1022_v57  ;;  %v800_v16 = vmul.f32 2.0, %v2619_v49 }
 0x111   : > { %v2668_v4 = vpop.f32.mrb[20].mxu0  ;;  %v2670_v61 = vpop.f32.mrb[20].mxu1  ;;  %v1191_v51 = vmin.f32 %v3785_v26, %v1190_v50  ;;  %v1227_v39 = vmin.f32 %v3784_v42, %v1226_v7  ;;  %v3791_v11 = vmax.f32 %v2691_v8, 0.0  ;;  %v2713_v35 = vadd.f32 %v2488_v38, %v991_v56 }
 0x112   : > { %v2679_v10 = vpop.f32.mrb[21].mxu0  ;;  %v2681_v0 = vpop.f32.mrb[21].mxu1  ;;  %3859 = vst [vmem:[#allocation17_spill] sm:$0xff] %v2710_v59  ;;  %v1023_v42 = vsub.f32 %v934_v47, %v799_v37  ;;  %v768_v26 = vmul.f32 2.0, %v2617_v44  ;;  %v3794_v63 = vmax.f32 %v2710_v59, 0.0  ;;  %v769_v44 = vmul.f32 2.0, %v2625_v33 }
 0x113   : > { %3860 = vst [vmem:[#allocation18_spill] sm:$0xff] %v2713_v35  ;;  %v939_v50 = vpop.permute.xlu0 %938  ;;  %v1228_v7 = vmin.f32 %v3790_v2, %v1227_v39  ;;  %v1193_v60 = vmin.f32 %v1191_v51, %v3791_v11  ;;  %v3795_v57 = vmax.f32 %v2713_v35, 0.0  ;;  %v944_v11 = vpop.permute.xlu1 %943  ;;  %v770_v1 = vmul.f32 2.0, %v2646_v34 }
 0x114   : > { %v2728_v36 = vadd.f32 %v2488_v38, %v1023_v42  ;;  %v992_v47 = vsub.f32 %v2466_v12, %v768_v26  ;;  %v1024_v39 = vsub.f32 %v939_v50, %v800_v16  ;;  %v993_v33 = vsub.f32 %v2466_v12, %v769_v44 }
 0x115   : > { %v2694_v29 = vpop.f32.mrb[22].mxu0  ;;  %v2696_v21 = vpop.f32.mrb[22].mxu1  ;;  %v1195_v51 = vmin.f32 %v1193_v60, %v3794_v63  ;;  %v1230_v2 = vmin.f32 %v1228_v7, %v3795_v57  ;;  %v801_v16 = vmul.f32 2.0, %v2627_v28  ;;  %v802_v60 = vmul.f32 2.0, %v2648_v9 }
 0x116   : > { %v2704_v62 = vpop.f32.mrb[23].mxu0  ;;  %v2706_v45 = vpop.f32.mrb[23].mxu1  ;;  %3861 = vst [vmem:[#allocation19_spill] sm:$0xff] %v2728_v36  ;;  %v3798_v5 = vmax.f32 %v2728_v36, 0.0  ;;  %v2742_v42 = vadd.f32 %v2486_v32, %v992_v47  ;;  %v2745_v26 = vadd.f32 %v2486_v32, %v1024_v39  ;;  %v771_v63 = vmul.f32 2.0, %v2651_v41 }
 0x117   : > { %v2764_v28 = vadd.f32 %v2488_v38, %v993_v33  ;;  %v1025_v34 = vsub.f32 %v939_v50, %v801_v16  ;;  %v994_v9 = vsub.f32 %v2468_v13, %v770_v1  ;;  %v1026_v41 = vsub.f32 %v944_v11, %v802_v60 }
 0x118   : > { %3862 = vst [vmem:[#allocation20_spill] sm:$0xff] %v2742_v42  ;;  %3863 = vst [vmem:[#allocation21_spill] sm:$0xff] %v2745_v26  ;;  %v1232_v47 = vmin.f32 %v1230_v2, %v3798_v5  ;;  %v3801_v39 = vmax.f32 %v2742_v42, 0.0  ;;  %v3803_v30 = vmax.f32 %v2745_v26, 0.0  ;;  %v995_v2 = vsub.f32 %v2468_v13, %v771_v63 }
 0x119   : > { %v2723_v27 = vpop.f32.mrb[24].mxu0  ;;  %v2725_v56 = vpop.f32.mrb[24].mxu1  ;;  %3864 = vst [vmem:[#allocation22_spill] sm:$0xff] %v2764_v28  ;;  %v3805_v5 = vmax.f32 %v2764_v28, 0.0  ;;  %v2773_v36 = vadd.f32 %v2488_v38, %v1025_v34  ;;  %v2776_v52 = vadd.f32 %v2486_v32, %v994_v9  ;;  %v2779_v50 = vadd.f32 %v2486_v32, %v1026_v41 }
 0x11a   : > { %v2732_v49 = vpop.f32.mrb[25].mxu0  ;;  %v2734_v37 = vpop.f32.mrb[25].mxu1  ;;  %v1197_v44 = vmin.f32 %v1195_v51, %v3801_v39  ;;  %v2788_v13 = vadd.f32 %v2488_v38, %v995_v2  ;;  %v803_v63 = vmul.f32 2.0, %v2653_v3  ;;  %v772_v16 = vmul.f32 2.0, %v2668_v4 }
 0x11b   : > { %3865 = vst [vmem:[#allocation23_spill] sm:$0xff] %v2773_v36  ;;  %3866 = vst [vmem:[#allocation24_spill] sm:$0xff] %v2776_v52  ;;  %v1234_v9 = vmin.f32 %v1232_v47, %v3805_v5  ;;  %v3806_v41 = vmax.f32 %v2773_v36, 0.0  ;;  %v3807_v39 = vmax.f32 %v2776_v52, 0.0  ;;  %v3814_v3 = vmax.f32 %v2779_v50, 0.0  ;;  %v949_v36 = vpop.permute.xlu0 %948 }
 0x11c   : > { %3867 = vst [vmem:[#allocation25_spill] sm:$0xff] %v2779_v50  ;;  %v1199_v51 = vmin.f32 %v1197_v44, %v3803_v30  ;;  %v1027_v26 = vsub.f32 %v944_v11, %v803_v63  ;;  %v996_v44 = vsub.f32 %v2470_v14, %v772_v16  ;;  %v3813_v30 = vmax.f32 %v2788_v13, 0.0 }
 0x11d   : > { %v2752_v7 = vpop.f32.mrb[26].mxu0  ;;  %v2754_v57 = vpop.f32.mrb[26].mxu1  ;;  %v1236_v2 = vmin.f32 %v1234_v9, %v3806_v41  ;;  %v804_v41 = vmul.f32 2.0, %v2670_v61  ;;  %v805_v28 = vmul.f32 2.0, %v2681_v0  ;;  %v774_v52 = vmul.f32 2.0, %v2694_v29 }
 0x11e   : > { %v2759_v35 = vpop.f32.mrb[27].mxu0  ;;  %v2761_v12 = vpop.f32.mrb[27].mxu1  ;;  %v1201_v4 = vmin.f32 %v1199_v51, %v3807_v39  ;;  %v2812_v5 = vadd.f32 %v2488_v38, %v1027_v26  ;;  %v2815_v11 = vadd.f32 %v2486_v32, %v996_v44  ;;  %v773_v39 = vmul.f32 2.0, %v2679_v10 }
 0x11f   : > { %v1238_v9 = vmin.f32 %v1236_v2, %v3813_v30  ;;  %v1028_v59 = vsub.f32 %v949_v36, %v804_v41  ;;  %v775_v2 = vmul.f32 2.0, %v2704_v62  ;;  %v954_v30 = vpop.permute.xlu1 %953  ;;  %v1029_v29 = vsub.f32 %v949_v36, %v805_v28 }
 0x120   : > { %v1203_v51 = vmin.f32 %v1201_v4, %v3814_v3  ;;  %v3817_v26 = vmax.f32 %v2812_v5, 0.0  ;;  %v1135_v44 = vmax.f32 %v2815_v11, 0.0  ;;  %v997_v50 = vsub.f32 %v2470_v14, %v773_v39 }
 0x121   : > { %v2781_v1 = vpop.f32.mrb[28].mxu0  ;;  %v2783_v33 = vpop.f32.mrb[28].mxu1  ;;  %v806_v4 = vmul.f32 2.0, %v2696_v21  ;;  %v2839_v3 = vadd.f32 %v2486_v32, %v1028_v59  ;;  %v998_v14 = vsub.f32 %v2472_v15, %v774_v52  ;;  %v999_v21 = vsub.f32 %v2472_v15, %v775_v2 }
 0x122   : > { %v2792_v60 = vpop.f32.mrb[29].mxu0  ;;  %v2794_v34 = vpop.f32.mrb[29].mxu1  ;;  %v1240_v61 = vmin.f32 %v1238_v9, %v3817_v26  ;;  %v1205_v10 = vmin.f32 %v1203_v51, %v1135_v44  ;;  %v2842_v0 = vadd.f32 %v2488_v38, %v997_v50  ;;  %v807_v62 = vmul.f32 2.0, %v2706_v45 }
 0x123   : > { %v1030_v39 = vsub.f32 %v954_v30, %v806_v4  ;;  %v776_v41 = vmul.f32 2.0, %v2723_v27  ;;  %v3819_v9 = vmax.f32 %v2839_v3, 0.0  ;;  %v2851_v59 = vadd.f32 %v2488_v38, %v1029_v29 }
 0x124   : > { %v3815_v51 = vmax.f32 %v2842_v0, 0.0  ;;  %v2854_v50 = vadd.f32 %v2486_v32, %v998_v14  ;;  %v2860_v52 = vadd.f32 %v2488_v38, %v999_v21  ;;  %v1031_v15 = vsub.f32 %v954_v30, %v807_v62 }
 0x125   : > { %v2807_v42 = vpop.f32.mrb[30].mxu0  ;;  %v2809_v47 = vpop.f32.mrb[30].mxu1  ;;  %v2857_v36 = vadd.f32 %v2486_v32, %v1030_v39  ;;  %v1000_v45 = vsub.f32 %v2474_v17, %v776_v41  ;;  %v1207_v27 = vmin.f32 %v1205_v10, %v3819_v9  ;;  %v3816_v4 = vmax.f32 %v2851_v59, 0.0 }
 0x126   : > { %v2817_v63 = vpop.f32.mrb[31].mxu0  ;;  %v2819_v16 = vpop.f32.mrb[31].mxu1  ;;  %v1242_v28 = vmin.f32 %v1240_v61, %v3815_v51  ;;  %v3818_v2 = vmax.f32 %v2854_v50, 0.0  ;;  %v2870_v29 = vadd.f32 %v2488_v38, %v1031_v15  ;;  %v808_v30 = vmul.f32 2.0, %v2725_v56 }
 0x127   : > { %v2873_v14 = vadd.f32 %v2486_v32, %v1000_v45  ;;  %v777_v39 = vmul.f32 2.0, %v2732_v49  ;;  %v1169_v21 = vmax.f32 %v2857_v36, 0.0  ;;  %v3822_v62 = vmax.f32 %v2860_v52, 0.0  ;;  %v959_v41 = vpop.permute.xlu0 %958 }
 0x128   : > { %v1244_v10 = vmin.f32 %v1242_v28, %v3816_v4  ;;  %v1192_v61 = vmin.f32 %v3818_v2, %v1207_v27  ;;  %v3820_v15 = vmax.f32 %v2870_v29, 0.0  ;;  %v1032_v51 = vsub.f32 %v959_v41, %v808_v30 }
 0x129   : > { %v1139_v45 = vmax.f32 %v2873_v14, 0.0  ;;  %v1001_v28 = vsub.f32 %v2474_v17, %v777_v39  ;;  %v809_v27 = vmul.f32 2.0, %v2734_v37  ;;  %v778_v4 = vmul.f32 2.0, %v2752_v7  ;;  %v964_v7 = vpop.permute.xlu1 %963 }
 0x12a   : > { %v1194_v56 = vmin.f32 %v1192_v61, %v1169_v21  ;;  %v1229_v49 = vmin.f32 %v3822_v62, %v1244_v10  ;;  %v2897_v9 = vadd.f32 %v2486_v32, %v1032_v51  ;;  %v810_v17 = vmul.f32 2.0, %v2754_v57 }
 0x12b   : > { %v2900_v61 = vadd.f32 %v2488_v38, %v1001_v28  ;;  %v1033_v10 = vsub.f32 %v959_v41, %v809_v27  ;;  %v1002_v30 = vsub.f32 %v2476_v18, %v778_v4  ;;  %v779_v37 = vmul.f32 2.0, %v2759_v35 }
 0x12c   : > { %v1231_v26 = vmin.f32 %v1229_v49, %v3820_v15  ;;  %v1196_v2 = vmin.f32 %v1194_v56, %v1139_v45  ;;  %v3833_v39 = vmax.f32 %v2897_v9, 0.0  ;;  %v811_v56 = vmul.f32 2.0, %v2761_v12 }
 0x12d   : > { %v3821_v49 = vmax.f32 %v2900_v61, 0.0  ;;  %v780_v51 = vmul.f32 2.0, %v2781_v1  ;;  %v2910_v15 = vadd.f32 %v2488_v38, %v1033_v10  ;;  %v2913_v41 = vadd.f32 %v2486_v32, %v1002_v30 }
 0x12e   : > { %v1034_v4 = vsub.f32 %v964_v7, %v810_v17  ;;  %v1003_v57 = vsub.f32 %v2476_v18, %v779_v37  ;;  %v1198_v35 = vmin.f32 %v1196_v2, %v3833_v39  ;;  %v1035_v30 = vsub.f32 %v964_v7, %v811_v56 }
 0x12f   : > { %v1233_v28 = vmin.f32 %v1231_v26, %v3821_v49  ;;  %v3823_v27 = vmax.f32 %v2910_v15, 0.0  ;;  %v3832_v12 = vmax.f32 %v2913_v41, 0.0  ;;  %v1004_v17 = vsub.f32 %v2482_v20, %v780_v51  ;;  %v969_v49 = vpop.permute.xlu0 %968 }
 0x130   : > { %v2923_v1 = vadd.f32 %v2486_v32, %v1034_v4  ;;  %v2926_v10 = vadd.f32 %v2488_v38, %v1003_v57  ;;  %v812_v18 = vmul.f32 2.0, %v2783_v33  ;;  %v781_v2 = vmul.f32 2.0, %v2792_v60 }
 0x131   : > { %v1235_v26 = vmin.f32 %v1233_v28, %v3823_v27  ;;  %v1200_v37 = vmin.f32 %v1198_v35, %v3832_v12  ;;  %v2938_v57 = vadd.f32 %v2488_v38, %v1035_v30  ;;  %v2941_v7 = vadd.f32 %v2486_v32, %v1004_v17 }
 0x132   : > { %v3825_v4 = vmax.f32 %v2923_v1, 0.0  ;;  %v3824_v62 = vmax.f32 %v2926_v10, 0.0  ;;  %v1036_v33 = vsub.f32 %v969_v49, %v812_v18  ;;  %v1005_v60 = vsub.f32 %v2482_v20, %v781_v2 }
 0x133   : > { %v813_v56 = vmul.f32 2.0, %v2794_v34  ;;  %v782_v51 = vmul.f32 2.0, %v2807_v42  ;;  %v3826_v27 = vmax.f32 %v2938_v57, 0.0  ;;  %v3830_v30 = vmax.f32 %v2941_v7, 0.0 }
 0x134   : > { %v1202_v35 = vmin.f32 %v1200_v37, %v3825_v4  ;;  %v1237_v28 = vmin.f32 %v1235_v26, %v3824_v62  ;;  %v2953_v17 = vadd.f32 %v2486_v32, %v1036_v33  ;;  %v2956_v18 = vadd.f32 %v2488_v38, %v1005_v60  ;;  %v974_v62 = vpop.permute.xlu1 %973 }
 0x135   : > { %v1037_v20 = vsub.f32 %v969_v49, %v813_v56  ;;  %v1006_v34 = vsub.f32 %v2484_v22, %v782_v51  ;;  %v814_v42 = vmul.f32 2.0, %v2809_v47  ;;  %v783_v2 = vmul.f32 2.0, %v2817_v63 }
 0x136   : > { %v1239_v26 = vmin.f32 %v1237_v28, %v3826_v27  ;;  %v1204_v37 = vmin.f32 %v1202_v35, %v3830_v30  ;;  %v3827_v33 = vmax.f32 %v2953_v17, 0.0  ;;  %v3829_v4 = vmax.f32 %v2956_v18, 0.0 }
 0x137   : > { %v2968_v60 = vadd.f32 %v2488_v38, %v1037_v20  ;;  %v2971_v49 = vadd.f32 %v2486_v32, %v1006_v34  ;;  %v1038_v47 = vsub.f32 %v974_v62, %v814_v42  ;;  %v1007_v63 = vsub.f32 %v2484_v22, %v783_v2 }
 0x138   : > { %v815_v56 = vmul.f32 2.0, %v2819_v16  ;;  %v1206_v51 = vmin.f32 %v1204_v37, %v3827_v33  ;;  %v1241_v35 = vmin.f32 %v1239_v26, %v3829_v4  ;;  %v3869_v12 = vmax.f32 %v2509_v23, 0.0 }
 0x139   : > { %v3828_v28 = vmax.f32 %v2968_v60, 0.0  ;;  %v1145_v27 = vmax.f32 %v2971_v49, 0.0  ;;  %v1113_v20 = vadd.f32 %v2486_v32, %v1038_v47  ;;  %v2983_v34 = vadd.f32 %v2488_v38, %v1007_v63 }
 0x13a   : > { %v1039_v42 = vsub.f32 %v974_v62, %v815_v56  ;;  %v1261_v39 = vsub.f32 0.0, %v3869_v12  ;;  %v3876_v12 = vmax.f32 %v2593_v48, 0.0  ;;  %v3883_v48 = vld [vmem:[#allocation17_spill] sm:$0xff] }
 0x13b   : > { %v1243_v22 = vmin.f32 %v1241_v35, %v3828_v28  ;;  %v1208_v16 = vmin.f32 %v1206_v51, %v1145_v27  ;;  %v1177_v2 = vmax.f32 %v1113_v20, 0.0  ;;  %v3831_v37 = vmax.f32 %v2983_v34, 0.0 }
 0x13c   : > { %v2989_v33 = vadd.f32 %v2488_v38, %v1039_v42 }
 0x13d   : > { %v1209_v26 = vmin.f32 %v1177_v2, %v1208_v16  ;;  %v1245_v49 = vmin.f32 %v1243_v22, %v3831_v37  ;;  %v3868_v22 = vmax.f32 %v2491_v46, 0.0 }
 0x13e   : > { %v3834_v32 = vmax.f32 %v2989_v33, 0.0 }
 0x13f   : > { %v1210_v47 = vrot.slane %v1209_v26, 4  ;;  %v1259_v37 = vsub.f32 0.0, %v3868_v22 }
 0x140   : > { %v1246_v62 = vmin.f32 %v3834_v32, %v1245_v49  ;;  %v3870_v49 = vmax.f32 %v2498_v55, 0.0  ;;  %v1267_v55 = vsub.f32 0.0, %v3876_v12 }
 0x141   : > { %v1211_v63 = vmin.f32 %v1209_v26, %v1210_v47 }
 0x142   : > { %v1247_v56 = vrot.slane %v1246_v62, 4  ;;  %v1291_v26 = vsub.f32 0.0, %v3870_v49 }
 0x143   : > { %v1212_v35 = vrot.slane %v1211_v63, 2 }
 0x144   : > { %v1248_v51 = vmin.f32 %v1246_v62, %v1247_v56  ;;  %v3871_v62 = vmax.f32 %v2512_v24, 0.0  ;;  %v3872_v56 = vmax.f32 %v2519_v6, 0.0  ;;  %v3878_v24 = vmax.f32 %v2612_v40, 0.0  ;;  %v3887_v40 = vld [vmem:[#allocation21_spill] sm:$0xff] }
 0x145   : > { %v1213_v20 = vmin.f32 %v1211_v63, %v1212_v35  ;;  %v3874_v35 = vmax.f32 %v2546_v54, 0.0  ;;  %v3879_v6 = vmax.f32 %v2632_v58, 0.0  ;;  %v3881_v54 = vmax.f32 %v2662_v25, 0.0 }
 0x146   : > { %v1249_v28 = vrot.slane %v1248_v51, 2  ;;  %v1263_v63 = vsub.f32 0.0, %v3871_v62  ;;  %v3888_v12 = vmax.f32 %v3887_v40, 0.0  ;;  %v3895_v40 = vmax.f32 %v2897_v9, 0.0 }
 0x147   : > { %v1214_v4 = vrot.slane %v1213_v20, 1  ;;  %v1295_v46 = vsub.f32 0.0, %v3874_v35  ;;  %v1303_v49 = vsub.f32 0.0, %v3881_v54  ;;  %v3893_v54 = vmax.f32 %v2839_v3, 0.0 }
 0x148   : > { %v1250_v38 = vmin.f32 %v1248_v51, %v1249_v28  ;;  %v3875_v51 = vmax.f32 %v2565_v19, 0.0  ;;  %v3882_v19 = vmax.f32 %v2691_v8, 0.0  ;;  %v1279_v8 = vsub.f32 0.0, %v1135_v44 }
 0x149   : > { %v1215_v30 = vmin.f32 %v1213_v20, %v1214_v4  ;;  %v1293_v4 = vsub.f32 0.0, %v3872_v56  ;;  %v3877_v20 = vmax.f32 %v2596_v43, 0.0  ;;  %v3884_v56 = vmax.f32 %v3883_v48, 0.0  ;;  %v3885_v43 = vld [vmem:[#allocation20_spill] sm:$0xff] }
 0x14a   : > { %v1251_v16 = vrot.slane %v1250_v38, 1  ;;  %v1297_v23 = vsub.f32 0.0, %v3875_v51  ;;  %v1273_v62 = vsub.f32 0.0, %v3882_v19  ;;  %v3886_v35 = vmax.f32 %v3885_v43, 0.0 }
 0x14b   : > { %v1253_v42 = vadd.f32 1e-05, %v1215_v30  ;;  %v3873_v30 = vmax.f32 %v2543_v53, 0.0  ;;  %v3880_v53 = vmax.f32 %v2659_v31, 0.0  ;;  %v1311_v19 = vsub.f32 0.0, %v3893_v54 }
 0x14c   : > { %v1252_v47 = vmin.f32 %v1250_v38, %v1251_v16  ;;  %v1299_v38 = vsub.f32 0.0, %v3877_v20  ;;  %v1301_v16 = vsub.f32 0.0, %v3879_v6  ;;  %v1275_v51 = vsub.f32 0.0, %v3886_v35 }
 0x14d   : > { %2102 = vrcp.f32 %v1253_v42  ;;  %v1265_v28 = vsub.f32 0.0, %v3873_v30  ;;  %v1269_v42 = vsub.f32 0.0, %v3878_v24  ;;  %v1271_v22 = vsub.f32 0.0, %v3880_v53  ;;  %v3889_v24 = vld [vmem:[#allocation24_spill] sm:$0xff]  ;;  %v3891_v53 = vld [vmem:[#allocation25_spill] sm:$0xff] }
 0x14e   : > { %v1305_v30 = vsub.f32 0.0, %v3884_v56  ;;  %v1307_v20 = vsub.f32 0.0, %v3888_v12  ;;  %v1254_v58 = vadd.f32 1e-05, %v1252_v47  ;;  %v3890_v6 = vmax.f32 %v3889_v24, 0.0 }
 0x14f   : > { %v3892_v32 = vmax.f32 %v3891_v53, 0.0  ;;  %v3894_v56 = vmax.f32 %v2854_v50, 0.0  ;;  %v1313_v35 = vsub.f32 0.0, %v1169_v21  ;;  %v1283_v47 = vsub.f32 0.0, %v1139_v45 }
 0x150   : > { %v1277_v31 = vsub.f32 0.0, %v3890_v6  ;;  %v1315_v12 = vsub.f32 0.0, %v3895_v40  ;;  %v3897_v44 = vmax.f32 %v2923_v1, 0.0  ;;  %v3898_v24 = vmax.f32 %v2941_v7, 0.0 }
 0x151   : > { %v1309_v25 = vsub.f32 0.0, %v3892_v32  ;;  %v1281_v43 = vsub.f32 0.0, %v3894_v56  ;;  %v3896_v32 = vmax.f32 %v2913_v41, 0.0  ;;  %v3899_v53 = vmax.f32 %v2953_v17, 0.0 }
 0x152   : > { %v1317_v3 = vsub.f32 0.0, %v3897_v44  ;;  %v1287_v6 = vsub.f32 0.0, %v3898_v24  ;;  %v1289_v21 = vsub.f32 0.0, %v1145_v27  ;;  %v1321_v54 = vsub.f32 0.0, %v1177_v2 }
 0x153   : > { %v1285_v11 = vsub.f32 0.0, %v3896_v32  ;;  %v1319_v36 = vsub.f32 0.0, %v3899_v53  ;;  %2104 = vrcp.f32 %v1254_v58 }
 0x157   : > { %v2103_v48 = vpop.eup %2102 }
 0x158   : > { %v1256_v50 = vmul.f32 2.0, %v2103_v48 }
 0x15a   : > { %v1323_v14 = vmul.f32 %v1259_v37, %v1256_v50  ;;  %v1325_v45 = vmul.f32 %v1261_v39, %v1256_v50  ;;  %v1327_v9 = vmul.f32 %v1263_v63, %v1256_v50  ;;  %v1329_v56 = vmul.f32 %v1265_v28, %v1256_v50 }
 0x15b   : > { %v1331_v40 = vmul.f32 %v1267_v55, %v1256_v50  ;;  %v1333_v41 = vmul.f32 %v1269_v42, %v1256_v50  ;;  %v3056_v32 = vmul.f32 %v1271_v22, %v1256_v50  ;;  %v3058_v1 = vmul.f32 %v1273_v62, %v1256_v50 }
 0x15c   : > { %v3060_v44 = vmul.f32 %v1275_v51, %v1256_v50  ;;  %v3062_v7 = vmul.f32 %v1277_v31, %v1256_v50  ;;  %v3064_v48 = vmul.f32 %v1279_v8, %v1256_v50  ;;  %v3066_v17 = vmul.f32 %v1281_v43, %v1256_v50 }
 0x15d   : > { %v3068_v27 = vmul.f32 %v1283_v47, %v1256_v50  ;;  %v3070_v2 = vmul.f32 %v1285_v11, %v1256_v50  ;;  %v3072_v39 = vmul.f32 %v1287_v6, %v1256_v50  ;;  %v3074_v37 = vmul.f32 %v1289_v21, %v1256_v50  ;;  %v2105_v11 = vpop.eup %2104  ;;  %v3915_v6 = vld [vmem:[#allocation4_spill] sm:$0xff] }
 0x15e   : > { %v3076_v63 = vmul.f32 %v1291_v26, %v1256_v50  ;;  %v3078_v28 = vmul.f32 %v1293_v4, %v1256_v50  ;;  %v3080_v55 = vmul.f32 %v1295_v46, %v1256_v50  ;;  %v3082_v42 = vmul.f32 %v1297_v23, %v1256_v50 }
 0x15f   : > { %v3084_v22 = vmul.f32 %v1299_v38, %v1256_v50  ;;  %v3086_v62 = vmul.f32 %v1301_v16, %v1256_v50  ;;  %v3088_v51 = vmul.f32 %v1303_v49, %v1256_v50  ;;  %v3090_v58 = vmul.f32 %v1305_v30, %v1256_v50  ;;  %v3911_v49 = vld [vmem:[#allocation3_spill] sm:$0xff] }
 0x160   : > { %v3092_v31 = vmul.f32 %v1307_v20, %v1256_v50  ;;  %v3094_v8 = vmul.f32 %v1309_v25, %v1256_v50  ;;  %v3096_v26 = vmul.f32 %v1311_v19, %v1256_v50  ;;  %v3098_v4 = vmul.f32 %v1313_v35, %v1256_v50  ;;  %v3913_v25 = vld [vmem:[#allocation6_spill] sm:$0xff] }
 0x161   : > { %3900 = vst [vmem:[#allocation17_spill] sm:$0xff] %v3086_v62  ;;  %3901 = vst [vmem:[#allocation20_spill] sm:$0xff] %v3088_v51  ;;  %v3100_v46 = vmul.f32 %v1315_v12, %v1256_v50  ;;  %v3102_v23 = vmul.f32 %v1317_v3, %v1256_v50  ;;  %v3104_v38 = vmul.f32 %v1319_v36, %v1256_v50  ;;  %v3912_v43 = vmax.f32 %v3911_v49, 0.0  ;;  %v3917_v12 = vld [vmem:[#allocation7_spill] sm:$0xff]  ;;  %v3921_v49 = vld [vmem:[#allocation8_spill] sm:$0xff] }
 0x162   : > { %3902 = vst [vmem:[#allocation21_spill] sm:$0xff] %v3090_v58  ;;  %3903 = vst [vmem:[#allocation24_spill] sm:$0xff] %v3092_v31  ;;  %v3106_v16 = vmul.f32 %v1321_v54, %v1256_v50  ;;  %v1387_v47 = vmul.f32 1.442695, %v1323_v14  ;;  %v1391_v20 = vmul.f32 1.442695, %v1325_v45 }
 0x163   : > { %3904 = vst [vmem:[#allocation25_spill] sm:$0xff] %v3094_v8  ;;  %3905 = vst [vmem:[#allocation26_spill] sm:$0xff] %v3096_v26  ;;  %v1260_v30 = vsub.f32 0.0, %v3912_v43  ;;  %v3914_v24 = vmax.f32 %v3913_v25, 0.0  ;;  %v3916_v35 = vmax.f32 %v3915_v6, 0.0  ;;  %v3918_v3 = vmax.f32 %v3917_v12, 0.0 }
 0x164   : > { %3906 = vst [vmem:[#allocation27_spill] sm:$0xff] %v3098_v4  ;;  %3907 = vst [vmem:[#allocation28_spill] sm:$0xff] %v3100_v46  ;;  %v1395_v36 = vmul.f32 1.442695, %v1327_v9  ;;  %v3919_v50 = vld [vmem:[#allocation5_spill] sm:$0xff]  ;;  %v3922_v43 = vmax.f32 %v3921_v49, 0.0  ;;  %2106 = vpow2.f32 %v1387_v47 }
 0x165   : > { %3908 = vst [vmem:[#allocation29_spill] sm:$0xff] %v3102_v23  ;;  %3909 = vst [vmem:[#allocation30_spill] sm:$0xff] %v3104_v38  ;;  %v1262_v19 = vsub.f32 0.0, %v3914_v24  ;;  %v3114_v53 = vsub.f32 0.0, %v3916_v35  ;;  %v3118_v21 = vsub.f32 0.0, %v3918_v3  ;;  %v3920_v54 = vmax.f32 %v3919_v50, 0.0 }
 0x166   : > { %3910 = vst [vmem:[#allocation31_spill] sm:$0xff] %v3106_v16  ;;  %v1266_v14 = vsub.f32 0.0, %v3922_v43  ;;  %v3923_v45 = vld [vmem:[#allocation9_spill] sm:$0xff]  ;;  %v3925_v25 = vld [vmem:[#allocation10_spill] sm:$0xff]  ;;  %v3927_v35 = vld [vmem:[#allocation11_spill] sm:$0xff]  ;;  %2108 = vpow2.f32 %v1391_v20 }
 0x167   : > { %v1264_v16 = vsub.f32 0.0, %v3920_v54  ;;  %v3924_v38 = vmax.f32 %v3923_v45, 0.0  ;;  %v3926_v24 = vmax.f32 %v3925_v25, 0.0  ;;  %v3928_v12 = vmax.f32 %v3927_v35, 0.0  ;;  %v3929_v46 = vld [vmem:[#allocation12_spill] sm:$0xff]  ;;  %v3931_v49 = vld [vmem:[#allocation13_spill] sm:$0xff] }
 0x168   : > { %v1399_v9 = vmul.f32 1.442695, %v1329_v56  ;;  %v3930_v50 = vmax.f32 %v3929_v46, 0.0  ;;  %v3932_v43 = vmax.f32 %v3931_v49, 0.0  ;;  %v3933_v45 = vld [vmem:[#allocation14_spill] sm:$0xff]  ;;  %v3935_v47 = vld [vmem:[#allocation15_spill] sm:$0xff]  ;;  %2110 = vpow2.f32 %v1395_v36 }
 0x169   : > { %v3126_v23 = vsub.f32 0.0, %v3924_v38  ;;  %v3130_v6 = vsub.f32 0.0, %v3926_v24  ;;  %v1268_v3 = vsub.f32 0.0, %v3928_v12  ;;  %v3934_v38 = vmax.f32 %v3933_v45, 0.0  ;;  %v3937_v8 = vld [vmem:[#allocation16_spill] sm:$0xff]  ;;  %v3939_v20 = vld [vmem:[#allocation18_spill] sm:$0xff] }
 0x16a   : > { %v3136_v54 = vsub.f32 0.0, %v3930_v50  ;;  %v1270_v4 = vsub.f32 0.0, %v3932_v43  ;;  %v3936_v25 = vmax.f32 %v3935_v47, 0.0  ;;  %v3938_v31 = vmax.f32 %v3937_v8, 0.0  ;;  %v3941_v50 = vld [vmem:[#allocation19_spill] sm:$0xff]  ;;  %v3943_v43 = vld [vmem:[#allocation22_spill] sm:$0xff] }
 0x16b   : > { %v3142_v26 = vsub.f32 0.0, %v3934_v38  ;;  %v3940_v56 = vmax.f32 %v3939_v20, 0.0  ;;  %v1403_v46 = vmul.f32 1.442695, %v1331_v40  ;;  %v3942_v58 = vmax.f32 %v3941_v50, 0.0  ;;  %v3945_v51 = vld [vmem:[#allocation23_spill] sm:$0xff] }
 0x16c   : > { %v1272_v24 = vsub.f32 0.0, %v3936_v25  ;;  %v3148_v35 = vsub.f32 0.0, %v3938_v31  ;;  %v3944_v45 = vmax.f32 %v3943_v43, 0.0  ;;  %v3946_v62 = vmax.f32 %v3945_v51, 0.0 }
 0x16d   : > { %v1274_v12 = vsub.f32 0.0, %v3940_v56  ;;  %v3154_v49 = vsub.f32 0.0, %v3942_v58  ;;  %v3947_v8 = vmax.f32 %v2788_v13, 0.0  ;;  %v3948_v25 = vmax.f32 %v2812_v5, 0.0 }
 0x16e   : > { %v1276_v38 = vsub.f32 0.0, %v3944_v45  ;;  %v3160_v47 = vsub.f32 0.0, %v3946_v62  ;;  %v3949_v40 = vmax.f32 %v2842_v0, 0.0  ;;  %2112 = vpow2.f32 %v1399_v9 }
 0x16f   : > { %v1278_v31 = vsub.f32 0.0, %v3947_v8  ;;  %v3166_v20 = vsub.f32 0.0, %v3948_v25  ;;  %v1407_v58 = vmul.f32 1.442695, %v1333_v41  ;;  %v3950_v56 = vmax.f32 %v2851_v59, 0.0 }
 0x170   : > { %v1280_v36 = vsub.f32 0.0, %v3949_v40  ;;  %v3951_v51 = vmax.f32 %v2860_v52, 0.0  ;;  %v3952_v43 = vmax.f32 %v2870_v29, 0.0  ;;  %v3953_v5 = vmax.f32 %v2900_v61, 0.0 }
 0x171   : > { %v3172_v50 = vsub.f32 0.0, %v3950_v56  ;;  %v3954_v8 = vmax.f32 %v2910_v15, 0.0  ;;  %v3955_v41 = vmax.f32 %v2926_v10, 0.0  ;;  %2114 = vpow2.f32 %v1403_v46 }
 0x172   : > { %v1282_v62 = vsub.f32 0.0, %v3951_v51  ;;  %v3178_v13 = vsub.f32 0.0, %v3952_v43  ;;  %v1284_v45 = vsub.f32 0.0, %v3953_v5  ;;  %v1411_v59 = vmul.f32 1.442695, %v3056_v32  ;;  %v3200_v32 = vpop.eup %2106 }
 0x173   : > { %v3184_v0 = vsub.f32 0.0, %v3954_v8  ;;  %v1286_v9 = vsub.f32 0.0, %v3955_v41  ;;  %v3956_v52 = vmax.f32 %v2938_v57, 0.0  ;;  %v3957_v29 = vmax.f32 %v2956_v18, 0.0 }
 0x174   : > { %v3958_v56 = vmax.f32 %v2968_v60, 0.0  ;;  %v1258_v51 = vmul.f32 2.0, %v2105_v11  ;;  %2116 = vpow2.f32 %v1407_v58  ;;  %v1415_v15 = vmul.f32 1.442695, %v3058_v1  ;;  %v3209_v11 = vpop.eup %2108 }
 0x175   : > { %v1318_v25 = vsub.f32 0.0, %v3956_v52  ;;  %v1288_v40 = vsub.f32 0.0, %v3957_v29  ;;  %v3959_v43 = vmax.f32 %v2983_v34, 0.0  ;;  %v3960_v46 = vmax.f32 %v2989_v33, 0.0 }
 0x176   : > { %v1320_v61 = vsub.f32 0.0, %v3958_v56  ;;  %v1419_v57 = vmul.f32 1.442695, %v3060_v44  ;;  %v3203_v8 = vmul.f32 %v1260_v30, %v1258_v51  ;;  %v3205_v18 = vmul.f32 %v1262_v19, %v1258_v51 }
 0x177   : > { %v1290_v10 = vsub.f32 0.0, %v3959_v43  ;;  %v1322_v5 = vsub.f32 0.0, %v3960_v46  ;;  %v3207_v60 = vmul.f32 %v1264_v16, %v1258_v51  ;;  %2118 = vpow2.f32 %v1411_v59  ;;  %v3224_v16 = vpop.eup %2110 }
 0x178   : > { %v3211_v1 = vmul.f32 %v1266_v14, %v1258_v51  ;;  %v3213_v34 = vmul.f32 %v1268_v3, %v1258_v51  ;;  %v3215_v58 = vmul.f32 %v1270_v4, %v1258_v51  ;;  %v1423_v33 = vmul.f32 1.442695, %v3062_v7 }
 0x179   : > { %v1515_v44 = vadd.f32 %v3209_v11, %v3200_v32  ;;  %v3220_v30 = vmul.f32 %v1272_v24, %v1258_v51  ;;  %v3222_v19 = vmul.f32 %v1274_v12, %v1258_v51  ;;  %2120 = vpow2.f32 %v1415_v15  ;;  %v3238_v24 = vpop.eup %2112 }
 0x17a   : > { %v3226_v41 = vmul.f32 %v1276_v38, %v1258_v51  ;;  %v3228_v14 = vmul.f32 %v1278_v31, %v1258_v51  ;;  %v3230_v3 = vmul.f32 %v1280_v36, %v1258_v51  ;;  %v1427_v4 = vmul.f32 1.442695, %v3064_v48 }
 0x17b   : > { %v1516_v7 = vadd.f32 %v3224_v16, %v1515_v44  ;;  %v3234_v59 = vmul.f32 %v1282_v62, %v1258_v51  ;;  %v3236_v52 = vmul.f32 %v1284_v45, %v1258_v51  ;;  %2122 = vpow2.f32 %v1419_v57  ;;  %v3254_v45 = vpop.eup %2114 }
 0x17c   : > { %v3240_v12 = vmul.f32 %v1286_v9, %v1258_v51  ;;  %v3242_v29 = vmul.f32 %v1288_v40, %v1258_v51  ;;  %v3244_v38 = vmul.f32 %v1290_v10, %v1258_v51  ;;  %v1431_v31 = vmul.f32 1.442695, %v3066_v17 }
 0x17d   : > { %v1517_v36 = vadd.f32 %v3238_v24, %v1516_v7  ;;  %v3249_v48 = vmul.f32 %v3114_v53, %v1258_v51  ;;  %v3252_v62 = vmul.f32 %v3118_v21, %v1258_v51  ;;  %2124 = vpow2.f32 %v1423_v33 }
 0x17e   : > { %v3257_v9 = vmul.f32 %v3126_v23, %v1258_v51  ;;  %v3260_v40 = vmul.f32 %v3130_v6, %v1258_v51  ;;  %v3263_v56 = vmul.f32 %v3136_v54, %v1258_v51  ;;  %v1435_v17 = vmul.f32 1.442695, %v3068_v27  ;;  %v3273_v43 = vpop.eup %2116 }
 0x17f   : > { %v1518_v53 = vadd.f32 %v3254_v45, %v1517_v36  ;;  %v3268_v15 = vmul.f32 %v3142_v26, %v1258_v51  ;;  %v3271_v21 = vmul.f32 %v3148_v35, %v1258_v51  ;;  %2126 = vpow2.f32 %v1427_v4 }
 0x180   : > { %v3276_v23 = vmul.f32 %v3154_v49, %v1258_v51  ;;  %v3279_v6 = vmul.f32 %v3160_v47, %v1258_v51  ;;  %v3282_v54 = vmul.f32 %v3166_v20, %v1258_v51  ;;  %v1439_v27 = vmul.f32 1.442695, %v3070_v2 }
 0x181   : > { %v1519_v26 = vadd.f32 %v3273_v43, %v1518_v53  ;;  %v3287_v10 = vmul.f32 %v3172_v50, %v1258_v51  ;;  %v3290_v35 = vmul.f32 %v3178_v13, %v1258_v51  ;;  %v3292_v46 = vpop.eup %2118  ;;  %2128 = vpow2.f32 %v1431_v31 }
 0x182   : > { %v3295_v49 = vmul.f32 %v3184_v0, %v1258_v51  ;;  %v3297_v47 = vmul.f32 %v1318_v25, %v1258_v51  ;;  %v3299_v20 = vmul.f32 %v1320_v61, %v1258_v51  ;;  %v3302_v57 = vmul.f32 %v1322_v5, %v1258_v51 }
 0x183   : > { %v1520_v2 = vadd.f32 %v3292_v46, %v1519_v26  ;;  %v3304_v33 = vpop.eup %2120  ;;  %2130 = vpow2.f32 %v1435_v17  ;;  %v1443_v50 = vmul.f32 1.442695, %v3072_v39  ;;  %v1447_v0 = vmul.f32 1.442695, %v3074_v37 }
 0x184   : > { %2132 = vpow2.f32 %v1439_v27  ;;  %v1451_v25 = vmul.f32 1.442695, %v3076_v63  ;;  %v1455_v51 = vmul.f32 1.442695, %v3078_v28  ;;  %v1389_v39 = vmul.f32 1.442695, %v3203_v8 }
 0x185   : > { %v1521_v13 = vadd.f32 %v3304_v33, %v1520_v2  ;;  %v3308_v44 = vpop.eup %2122  ;;  %2134 = vpow2.f32 %v1443_v50  ;;  %v1393_v31 = vmul.f32 1.442695, %v3205_v18  ;;  %v1459_v37 = vmul.f32 1.442695, %v3080_v55 }
 0x186   : > { %2136 = vpow2.f32 %v1447_v0  ;;  %v1397_v17 = vmul.f32 1.442695, %v3207_v60  ;;  %v1463_v28 = vmul.f32 1.442695, %v3082_v42  ;;  %v1401_v18 = vmul.f32 1.442695, %v3211_v1 }
 0x187   : > { %v1522_v61 = vadd.f32 %v3308_v44, %v1521_v13  ;;  %v3313_v4 = vpop.eup %2124  ;;  %2138 = vpow2.f32 %v1451_v25  ;;  %v1467_v55 = vmul.f32 1.442695, %v3084_v22  ;;  %v1405_v60 = vmul.f32 1.442695, %v3213_v34  ;;  %v3963_v42 = vld [vmem:[#allocation17_spill] sm:$0xff]  ;;  %v3964_v0 = vld [vmem:[#allocation20_spill] sm:$0xff] }
 0x188   : > { %2140 = vpow2.f32 %v1455_v51  ;;  %v1471_v2 = vmul.f32 1.442695, %v3963_v42  ;;  %v1409_v1 = vmul.f32 1.442695, %v3215_v58  ;;  %v1475_v22 = vmul.f32 1.442695, %v3964_v0 }
 0x189   : > { %v1523_v5 = vadd.f32 %v3313_v4, %v1522_v61  ;;  %v3318_v7 = vpop.eup %2126  ;;  %2142 = vpow2.f32 %v1389_v39  ;;  %v1413_v34 = vmul.f32 1.442695, %v3220_v30  ;;  %v1417_v58 = vmul.f32 1.442695, %v3222_v19  ;;  %v3968_v0 = vld [vmem:[#allocation26_spill] sm:$0xff] }
 0x18a   : > { %2144 = vpow2.f32 %v1393_v31 }
 0x18b   : > { %v1524_v63 = vadd.f32 %v3318_v7, %v1523_v5  ;;  %v3323_v36 = vpop.eup %2128  ;;  %2146 = vpow2.f32 %v1459_v37  ;;  %v3965_v5 = vld [vmem:[#allocation21_spill] sm:$0xff] }
 0x18c   : > { %3961 = vst [vmem:[#allocation3_spill] sm:$0xff] %v3323_v36  ;;  %2148 = vpow2.f32 %v1397_v17  ;;  %v1479_v39 = vmul.f32 1.442695, %v3965_v5  ;;  %v3966_v17 = vld [vmem:[#allocation24_spill] sm:$0xff]  ;;  %v1429_v5 = vmul.f32 1.442695, %v3230_v3 }
 0x18d   : > { %v1525_v53 = vadd.f32 %v3323_v36, %v1524_v63  ;;  %v3328_v8 = vpop.eup %2130  ;;  %2150 = vpow2.f32 %v1463_v28  ;;  %v1483_v28 = vmul.f32 1.442695, %v3966_v17 }
 0x18e   : > { %v3333_v26 = vpop.eup %2132  ;;  %2152 = vpow2.f32 %v1401_v18  ;;  %v1421_v18 = vmul.f32 1.442695, %v3226_v41  ;;  %v1491_v41 = vmul.f32 1.442695, %v3968_v0  ;;  %v1437_v0 = vmul.f32 1.442695, %v3236_v52 }
 0x18f   : > { %v1526_v27 = vadd.f32 %v3328_v8, %v1525_v53  ;;  %3962 = vst [vmem:[#allocation6_spill] sm:$0xff] %v3333_v26  ;;  %v3338_v13 = vpop.eup %2134  ;;  %2154 = vpow2.f32 %v1467_v55 }
 0x190   : > { %v3343_v61 = vpop.eup %2136  ;;  %2156 = vpow2.f32 %v1405_v60 }
 0x191   : > { %v1527_v50 = vadd.f32 %v3333_v26, %v1526_v27  ;;  %v3346_v51 = vpop.eup %2138  ;;  %2158 = vpow2.f32 %v1471_v2  ;;  %v3967_v27 = vld [vmem:[#allocation25_spill] sm:$0xff] }
 0x192   : > { %v3350_v37 = vpop.eup %2140  ;;  %2160 = vpow2.f32 %v1409_v1  ;;  %v1487_v60 = vmul.f32 1.442695, %v3967_v27 }
 0x193   : > { %v1528_v25 = vadd.f32 %v3338_v13, %v1527_v50  ;;  %v3353_v63 = vpop.eup %2142  ;;  %2162 = vpow2.f32 %v1475_v22  ;;  %v1425_v50 = vmul.f32 1.442695, %v3228_v14 }
 0x194   : > { %v3357_v30 = vpop.eup %2144  ;;  %2164 = vpow2.f32 %v1413_v34 }
 0x195   : > { %v1529_v31 = vadd.f32 %v3343_v61, %v1528_v25  ;;  %v3360_v55 = vpop.eup %2146  ;;  %2166 = vpow2.f32 %v1479_v39  ;;  %v1552_v19 = vadd.f32 %v3357_v30, %v3353_v63 }
 0x196   : > { %v3366_v2 = vpop.eup %2148  ;;  %2168 = vpow2.f32 %v1417_v58 }
 0x197   : > { %v1530_v53 = vadd.f32 %v3346_v51, %v1529_v31  ;;  %v3369_v1 = vpop.eup %2150  ;;  %2170 = vpow2.f32 %v1483_v28  ;;  %v1553_v25 = vadd.f32 %v3366_v2, %v1552_v19  ;;  %v3969_v31 = vld [vmem:[#allocation27_spill] sm:$0xff] }
 0x198   : > { %v3374_v34 = vpop.eup %2152  ;;  %2172 = vpow2.f32 %v1421_v18  ;;  %v1495_v58 = vmul.f32 1.442695, %v3969_v31  ;;  %v3970_v18 = vld [vmem:[#allocation28_spill] sm:$0xff] }
 0x199   : > { %v1531_v42 = vadd.f32 %v3350_v37, %v1530_v53  ;;  %v3377_v39 = vpop.eup %2154  ;;  %2174 = vpow2.f32 %v1487_v60  ;;  %v1554_v17 = vadd.f32 %v3374_v34, %v1553_v25  ;;  %v1433_v53 = vmul.f32 1.442695, %v3234_v59 }
 0x19a   : > { %v3382_v28 = vpop.eup %2156  ;;  %2176 = vpow2.f32 %v1425_v50  ;;  %v3971_v50 = vld [vmem:[#allocation29_spill] sm:$0xff] }
 0x19b   : > { %v1532_v22 = vadd.f32 %v3360_v55, %v1531_v42  ;;  %v3385_v27 = vpop.eup %2158  ;;  %2178 = vpow2.f32 %v1491_v41  ;;  %v1499_v42 = vmul.f32 1.442695, %v3970_v18  ;;  %v1555_v60 = vadd.f32 %v3382_v28, %v1554_v17 }
 0x19c   : > { %v3390_v19 = vpop.eup %2160  ;;  %2180 = vpow2.f32 %v1429_v5  ;;  %v1503_v25 = vmul.f32 1.442695, %v3971_v50  ;;  %v3972_v5 = vld [vmem:[#allocation30_spill] sm:$0xff] }
 0x19d   : > { %v1533_v14 = vadd.f32 %v3369_v1, %v1532_v22  ;;  %v3393_v22 = vpop.eup %2162  ;;  %2182 = vpow2.f32 %v1495_v58  ;;  %v1556_v41 = vadd.f32 %v3390_v19, %v1555_v60  ;;  %v1507_v18 = vmul.f32 1.442695, %v3972_v5 }
 0x19e   : > { %v3398_v31 = vpop.eup %2164  ;;  %2184 = vpow2.f32 %v1433_v53  ;;  %v3974_v53 = vld [vmem:[#allocation31_spill] sm:$0xff] }
 0x19f   : > { %v1534_v3 = vadd.f32 %v3377_v39, %v1533_v14  ;;  %v1441_v14 = vmul.f32 1.442695, %v3240_v12  ;;  %v3401_v17 = vpop.eup %2166  ;;  %2186 = vpow2.f32 %v1499_v42  ;;  %v1557_v58 = vadd.f32 %v3398_v31, %v1556_v41 }
 0x1a0   : > { %v3406_v26 = vpop.eup %2168  ;;  %2188 = vpow2.f32 %v1437_v0  ;;  %v1511_v50 = vmul.f32 1.442695, %v3974_v53 }
 0x1a1   : > { %v1535_v59 = vadd.f32 %v3385_v27, %v1534_v3  ;;  %3973 = vst [vmem:[#allocation4_spill] sm:$0xff] %v3406_v26  ;;  %v1445_v3 = vmul.f32 1.442695, %v3242_v29  ;;  %v3409_v60 = vpop.eup %2170  ;;  %2190 = vpow2.f32 %v1503_v25  ;;  %v1558_v42 = vadd.f32 %v3406_v26, %v1557_v58 }
 0x1a2   : > { %v3414_v36 = vpop.eup %2172  ;;  %2192 = vpow2.f32 %v1441_v14  ;;  %v1453_v25 = vmul.f32 1.442695, %v3249_v48  ;;  %v1461_v48 = vmul.f32 1.442695, %v3257_v9  ;;  %v1469_v9 = vmul.f32 1.442695, %v3263_v56 }
 0x1a3   : > { %v1536_v52 = vadd.f32 %v3393_v22, %v1535_v59  ;;  %v1449_v59 = vmul.f32 1.442695, %v3244_v38  ;;  %v3417_v41 = vpop.eup %2174  ;;  %2194 = vpow2.f32 %v1507_v18  ;;  %v1559_v29 = vadd.f32 %v3414_v36, %v1558_v42 }
 0x1a4   : > { %v3421_v5 = vpop.eup %2176  ;;  %2196 = vpow2.f32 %v1445_v3  ;;  %v1457_v18 = vmul.f32 1.442695, %v3252_v62  ;;  %v1465_v62 = vmul.f32 1.442695, %v3260_v40  ;;  %v1473_v40 = vmul.f32 1.442695, %v3268_v15 }
 0x1a5   : > { %v1537_v12 = vadd.f32 %v3401_v17, %v1536_v52  ;;  %3975 = vst [vmem:[#allocation7_spill] sm:$0xff] %v3421_v5  ;;  %v3424_v52 = vpop.eup %2178  ;;  %2198 = vpow2.f32 %v1511_v50  ;;  %v1560_v14 = vadd.f32 %v3421_v5, %v1559_v29  ;;  %v1477_v56 = vmul.f32 1.442695, %v3271_v21 }
 0x1a6   : > { %v3428_v38 = vpop.eup %2180  ;;  %2200 = vpow2.f32 %v1449_v59  ;;  %v1481_v15 = vmul.f32 1.442695, %v3276_v23 }
 0x1a7   : > { %v1538_v0 = vadd.f32 %v3409_v60, %v1537_v12  ;;  %v3431_v53 = vpop.eup %2182  ;;  %v1561_v3 = vadd.f32 %v3428_v38, %v1560_v14  ;;  %2202 = vpow2.f32 %v1453_v25 }
 0x1a8   : > { %v3435_v42 = vpop.eup %2184  ;;  %2204 = vpow2.f32 %v1457_v18 }
 0x1a9   : > { %v1539_v58 = vadd.f32 %v3417_v41, %v1538_v0  ;;  %3976 = vst [vmem:[#allocation5_spill] sm:$0xff] %v3435_v42  ;;  %v3438_v50 = vpop.eup %2186  ;;  %v1562_v29 = vadd.f32 %v3435_v42, %v1561_v3  ;;  %2206 = vpow2.f32 %v1461_v48 }
 0x1aa   : > { %v3442_v59 = vpop.eup %2188  ;;  %2208 = vpow2.f32 %v1465_v62 }
 0x1ab   : > { %v1540_v12 = vadd.f32 %v3424_v52, %v1539_v58  ;;  %3977 = vst [vmem:[#allocation8_spill] sm:$0xff] %v3442_v59  ;;  %v3445_v5 = vpop.eup %2190  ;;  %v1563_v14 = vadd.f32 %v3442_v59, %v1562_v29  ;;  %2210 = vpow2.f32 %v1469_v9 }
 0x1ac   : > { %v3449_v25 = vpop.eup %2192  ;;  %2212 = vpow2.f32 %v1473_v40 }
 0x1ad   : > { %v1541_v0 = vadd.f32 %v3431_v53, %v1540_v12  ;;  %3978 = vst [vmem:[#allocation9_spill] sm:$0xff] %v3449_v25  ;;  %v3452_v26 = vpop.eup %2194  ;;  %v1564_v3 = vadd.f32 %v3449_v25, %v1563_v14  ;;  %2214 = vpow2.f32 %v1477_v56 }
 0x1ae   : > { %v3456_v18 = vpop.eup %2196  ;;  %2216 = vpow2.f32 %v1481_v15  ;;  %v1501_v15 = vmul.f32 1.442695, %v3295_v49  ;;  %v1509_v49 = vmul.f32 1.442695, %v3299_v20 }
 0x1af   : > { %v1542_v58 = vadd.f32 %v3438_v50, %v1541_v0  ;;  %3979 = vst [vmem:[#allocation10_spill] sm:$0xff] %v3456_v18  ;;  %v3459_v42 = vpop.eup %2198  ;;  %v1565_v29 = vadd.f32 %v3456_v18, %v1564_v3  ;;  %v1485_v3 = vmul.f32 1.442695, %v3279_v6 }
 0x1b0   : > { %v3463_v48 = vpop.eup %2200 }
 0x1b1   : > { %v1543_v12 = vadd.f32 %v3445_v5, %v1542_v58  ;;  %3980 = vst [vmem:[#allocation11_spill] sm:$0xff] %v3463_v48  ;;  %v1566_v14 = vadd.f32 %v3463_v48, %v1565_v29  ;;  %v3468_v25 = vpop.eup %2202  ;;  %2218 = vpow2.f32 %v1485_v3 }
 0x1b3   : > { %v1544_v0 = vadd.f32 %v3452_v26, %v1543_v12  ;;  %v1567_v59 = vadd.f32 %v3468_v25, %v1566_v14  ;;  %v3472_v12 = vpop.eup %2204  ;;  %v1493_v14 = vmul.f32 1.442695, %v3287_v10 }
 0x1b4   : > { %v3476_v18 = vpop.eup %2206 }
 0x1b5   : > { %v1545_v58 = vadd.f32 %v3459_v42, %v1544_v0  ;;  %v1568_v21 = vadd.f32 %v3472_v12, %v1567_v59  ;;  %v1489_v0 = vmul.f32 1.442695, %v3282_v54  ;;  %v3480_v23 = vpop.eup %2208  ;;  %v1497_v59 = vmul.f32 1.442695, %v3290_v35 }
 0x1b6   : > { %v3484_v6 = vpop.eup %2210 }
 0x1b7   : > { %v1546_v62 = vrot.slane %v1545_v58, 4  ;;  %v1569_v40 = vadd.f32 %v3476_v18, %v1568_v21  ;;  %2220 = vpow2.f32 %v1489_v0 }
 0x1b8   : > { %2222 = vpow2.f32 %v1493_v14 }
 0x1b9   : > { %v1547_v9 = vadd.f32 %v1546_v62, %v1545_v58  ;;  %v1570_v56 = vadd.f32 %v3480_v23, %v1569_v40  ;;  %v3489_v62 = vpop.eup %2212  ;;  %2224 = vpow2.f32 %v1497_v59 }
 0x1ba   : > { %v3492_v10 = vpop.eup %2214  ;;  %2226 = vpow2.f32 %v1501_v15 }
 0x1bb   : > { %v1548_v29 = vrot.slane %v1547_v9, 2  ;;  %v1571_v54 = vadd.f32 %v3484_v6, %v1570_v56  ;;  %v3496_v35 = vpop.eup %2216 }
 0x1bc   : > { %v3500_v40 = vpop.eup %2218 }
 0x1bd   : > { %v1549_v48 = vadd.f32 %v1548_v29, %v1547_v9  ;;  %v1572_v3 = vadd.f32 %v3489_v62, %v1571_v54  ;;  %v1505_v9 = vmul.f32 1.442695, %v3297_v47 }
 0x1bf   : > { %v1550_v58 = vrot.slane %v1549_v48, 1  ;;  %v1573_v0 = vadd.f32 %v3492_v10, %v1572_v3 }
 0x1c1   : > { %v1551_v21 = vadd.f32 %v1550_v58, %v1549_v48  ;;  %v1574_v29 = vadd.f32 %v3496_v35, %v1573_v0  ;;  %v1513_v48 = vmul.f32 1.442695, %v3302_v57  ;;  %v3504_v56 = vpop.eup %2220 }
 0x1c2   : > { %v3507_v59 = vpop.eup %2222 }
 0x1c3   : > { %2228 = vrcp.f32 %v1551_v21  ;;  %v1575_v14 = vadd.f32 %v3500_v40, %v1574_v29  ;;  %v3510_v20 = vpop.eup %2224 }
 0x1c4   : > { %2230 = vpow2.f32 %v1505_v9  ;;  %v3512_v15 = vpop.eup %2226 }
 0x1c5   : > { %2232 = vpow2.f32 %v1509_v49  ;;  %v1576_v47 = vadd.f32 %v3504_v56, %v1575_v14 }
 0x1c6   : > { %2234 = vpow2.f32 %v1513_v48 }
 0x1c7   : > { %v1577_v58 = vadd.f32 %v3507_v59, %v1576_v47 }
 0x1c9   : > { %v1578_v54 = vadd.f32 %v3510_v20, %v1577_v58 }
 0x1cb   : > { %v1579_v57 = vadd.f32 %v3512_v15, %v1578_v54 }
 0x1cd   : > { %v3515_v21 = vpop.eup %2228 }
 0x1ce   : > { %v3518_v3 = vpop.eup %2230  ;;  %v3523_v0 = vmul.f32 %v3515_v21, %v3338_v13  ;;  %v3529_v29 = vmul.f32 %v3515_v21, %v3346_v51  ;;  %v3533_v48 = vmul.f32 %v3515_v21, %v3360_v55  ;;  %v3537_v14 = vmul.f32 %v3515_v21, %v3343_v61 }
 0x1cf   : > { %v1580_v9 = vadd.f32 %v3518_v3, %v1579_v57  ;;  %v3525_v49 = vpop.eup %2232  ;;  %v3542_v13 = vmul.f32 %v3515_v21, %v3377_v39  ;;  %v3546_v58 = vmul.f32 %v3515_v21, %v3350_v37  ;;  %v3550_v51 = vmul.f32 %v3515_v21, %v3393_v22 }
 0x1d0   : > { %v3552_v55 = vpop.eup %2234  ;;  %v3556_v61 = vmul.f32 %v3515_v21, %v3369_v1  ;;  %v3560_v54 = vmul.f32 %v3515_v21, %v3409_v60  ;;  %v3564_v39 = vmul.f32 %v3515_v21, %v3385_v27  ;;  %v3568_v37 = vmul.f32 %v3515_v21, %v3424_v52 }
 0x1d1   : > { %v1581_v47 = vadd.f32 %v3525_v49, %v1580_v9  ;;  %3981 = vst [vmem:[#allocation12_spill] sm:$0xff] %v3552_v55  ;;  %v3573_v57 = vmul.f32 %v3515_v21, %v3401_v17  ;;  %v3577_v1 = vmul.f32 %v3515_v21, %v3438_v50  ;;  %v3581_v60 = vmul.f32 %v3515_v21, %v3417_v41 }
 0x1d2   : > { %v3585_v27 = vmul.f32 %v3515_v21, %v3452_v26  ;;  %v3589_v52 = vmul.f32 %v3515_v21, %v3431_v53  ;;  %v3593_v17 = vmul.f32 %v3515_v21, %v3445_v5  ;;  %v3597_v50 = vmul.f32 %v3515_v21, %v3459_v42 }
 0x1d3   : > { %v1582_v22 = vadd.f32 %v3552_v55, %v1581_v47  ;;  %3982 = vst [vmem:[#allocation13_spill] sm:$0xff] %v3577_v1  ;;  %3983 = vst [vmem:[#allocation14_spill] sm:$0xff] %v3581_v60  ;;  %v1595_v26 = vmul.f32 %v3515_v21, %v3209_v11  ;;  %v1593_v53 = vmul.f32 %v3515_v21, %v3200_v32 }
 0x1d4   : > { %3984 = vst [vmem:[#allocation15_spill] sm:$0xff] %v3589_v52  ;;  %3985 = vst [vmem:[#allocation16_spill] sm:$0xff] %v3593_v17  ;;  %v1601_v5 = vmul.f32 %v3515_v21, %v3254_v45  ;;  %v1597_v42 = vmul.f32 %v3515_v21, %v3224_v16  ;;  %v3615_v11 = vmul.f32 %v3515_v21, %v3308_v44 }
 0x1d5   : > { %3986 = vst [vmem:[#allocation18_spill] sm:$0xff] %v3597_v50  ;;  %v1583_v9 = vrot.slane %v1582_v22, 4  ;;  %v3619_v32 = vmul.f32 %v3515_v21, %v3273_v43  ;;  %v3623_v45 = vmul.f32 %v3515_v21, %v3318_v7 }
 0x1d7   : > { %v1584_v47 = vadd.f32 %v1583_v9, %v1582_v22  ;;  %v1605_v22 = vmul.f32 %v3515_v21, %v3292_v46 }
 0x1d9   : > { %v1585_v41 = vrot.slane %v1584_v47, 2 }
 0x1db   : > { %v1586_v55 = vadd.f32 %v1585_v41, %v1584_v47 }
 0x1dd   : > { %v1587_v60 = vrot.slane %v1586_v55, 1 }
 0x1df   : > { %v1588_v1 = vadd.f32 %v1587_v60, %v1586_v55  ;;  %v1599_v55 = vmul.f32 %v3515_v21, %v3238_v24 }
 0x1e1   : > { %2236 = vrcp.f32 %v1588_v1 }
 0x1eb   : > { %v3609_v9 = vpop.eup %2236 }
 0x1ec   : > { %v1596_v16 = vmul.f32 %v3609_v9, %v3357_v30  ;;  %v1594_v46 = vmul.f32 %v3609_v9, %v3353_v63  ;;  %v1602_v24 = vmul.f32 %v3609_v9, %v3382_v28  ;;  %v1598_v44 = vmul.f32 %v3609_v9, %v3366_v2 }
 0x1ed   : > { %v1606_v43 = vmul.f32 %v3609_v9, %v3398_v31  ;;  %v1600_v1 = vmul.f32 %v3609_v9, %v3374_v34  ;;  %v1610_v7 = vmul.f32 %v3609_v9, %v3414_v36  ;;  %v1604_v30 = vmul.f32 %v3609_v9, %v3390_v19 }
 0x1ee   : > { %v1658_v60 = vmax.f32 %v1595_v26, %v1596_v16  ;;  %v1657_v63 = vmax.f32 %v1593_v53, %v1594_v46  ;;  %v1661_v47 = vmax.f32 %v1601_v5, %v1602_v24  ;;  %v1659_v41 = vmax.f32 %v1597_v42, %v1598_v44  ;;  %v3987_v53 = vld [vmem:[#allocation3_spill] sm:$0xff]  ;;  %v3988_v42 = vld [vmem:[#allocation6_spill] sm:$0xff] }
 0x1ef   : > { %v1663_v28 = vmax.f32 %v1605_v22, %v1606_v43  ;;  %v1660_v50 = vmax.f32 %v1599_v55, %v1600_v1  ;;  %v1665_v2 = vmax.f32 %v3615_v11, %v1610_v7  ;;  %v1662_v17 = vmax.f32 %v3619_v32, %v1604_v30  ;;  %v3989_v55 = vld [vmem:[#allocation4_spill] sm:$0xff]  ;;  %v3991_v16 = vld [vmem:[#allocation7_spill] sm:$0xff]  ;;  %v3992_v24 = vld [vmem:[#allocation10_spill] sm:$0xff] }
 0x1f0   : > { %v1722_v31 = vmax.f32 %v1658_v60, 0.0  ;;  %v1721_v52 = vmax.f32 %v1657_v63, 0.0  ;;  %v1607_v34 = vmul.f32 %v3515_v21, %v3304_v33  ;;  %v3647_v36 = vmul.f32 %v3515_v21, %v3328_v8  ;;  %v3990_v32 = vld [vmem:[#allocation8_spill] sm:$0xff]  ;;  %v3994_v30 = vld [vmem:[#allocation9_spill] sm:$0xff] }
 0x1f1   : > { %v1725_v19 = vmax.f32 %v1661_v47, 0.0  ;;  %v3651_v26 = vmul.f32 %v3515_v21, %v3313_v4  ;;  %v3655_v5 = vmul.f32 %v3515_v21, %v3987_v53  ;;  %v3659_v22 = vmul.f32 %v3515_v21, %v3988_v42  ;;  %v3993_v21 = vld [vmem:[#allocation5_spill] sm:$0xff]  ;;  %v3995_v53 = vld [vmem:[#allocation11_spill] sm:$0xff] }
 0x1f2   : > { %1822 = vmax.xlane.f32.xlu1 %v1722_v31  ;;  %1820 = vmax.xlane.f32.xlu0 %v1721_v52  ;;  %v1723_v33 = vmax.f32 %v1659_v41, 0.0  ;;  %v1614_v8 = vmul.f32 %v3609_v9, %v3428_v38  ;;  %v1608_v11 = vmul.f32 %v3609_v9, %v3989_v55  ;;  %v1618_v4 = vmul.f32 %v3609_v9, %v3990_v32 }
 0x1f3   : > { %v1612_v46 = vmul.f32 %v3609_v9, %v3991_v16  ;;  %v1622_v44 = vmul.f32 %v3609_v9, %v3992_v24  ;;  %v1616_v43 = vmul.f32 %v3609_v9, %v3993_v21  ;;  %v3675_v52 = vmul.f32 %v3609_v9, %v3468_v25 }
 0x1f4   : > { %v1667_v38 = vmax.f32 %v3623_v45, %v1614_v8  ;;  %v1664_v1 = vmax.f32 %v1607_v34, %v1608_v11  ;;  %v1669_v7 = vmax.f32 %v3647_v36, %v1618_v4  ;;  %v1620_v60 = vmul.f32 %v3609_v9, %v3994_v30  ;;  %v3998_v11 = vld [vmem:[#allocation15_spill] sm:$0xff]  ;;  %v4000_v4 = vld [vmem:[#allocation12_spill] sm:$0xff] }
 0x1f5   : > { %v1666_v63 = vmax.f32 %v3651_v26, %v1612_v46  ;;  %v1671_v47 = vmax.f32 %v3523_v0, %v1622_v44  ;;  %v1668_v41 = vmax.f32 %v3655_v5, %v1616_v43  ;;  %v1673_v31 = vmax.f32 %v3529_v29, %v3675_v52  ;;  %v4001_v46 = vld [vmem:[#allocation18_spill] sm:$0xff] }
 0x1f6   : > { %1828 = vmax.xlane.f32.xlu1 %v1725_v19  ;;  %1824 = vmax.xlane.f32.xlu0 %v1723_v33  ;;  %v1670_v25 = vmax.f32 %v3659_v22, %v1620_v60  ;;  %v1727_v45 = vmax.f32 %v1663_v28, 0.0  ;;  %v1724_v34 = vmax.f32 %v1660_v50, 0.0  ;;  %v1630_v36 = vmul.f32 %v3609_v9, %v3476_v18 }
 0x1f7   : > { %v1624_v42 = vmul.f32 %v3609_v9, %v3995_v53  ;;  %v1634_v0 = vmul.f32 %v3609_v9, %v3484_v6  ;;  %v1628_v26 = vmul.f32 %v3609_v9, %v3472_v12  ;;  %v1638_v29 = vmul.f32 %v3609_v9, %v3492_v10 }
 0x1f8   : > { %v1632_v19 = vmul.f32 %v3609_v9, %v3480_v23  ;;  %v1642_v50 = vmul.f32 %v3609_v9, %v3500_v40  ;;  %v1675_v18 = vmax.f32 %v3533_v48, %v1630_v36  ;;  %v1729_v23 = vmax.f32 %v1665_v2, 0.0  ;;  %v3996_v2 = vld [vmem:[#allocation13_spill] sm:$0xff] }
 0x1f9   : > { %v1672_v28 = vmax.f32 %v3537_v14, %v1624_v42  ;;  %v1677_v6 = vmax.f32 %v3542_v13, %v1634_v0  ;;  %v1674_v5 = vmax.f32 %v3546_v58, %v1628_v26  ;;  %v1679_v12 = vmax.f32 %v3550_v51, %v1638_v29 }
 0x1fa   : > { %1832 = vmax.xlane.f32.xlu1 %v1727_v45  ;;  %1826 = vmax.xlane.f32.xlu0 %v1724_v34  ;;  %v1676_v10 = vmax.f32 %v3556_v61, %v1632_v19  ;;  %v1681_v22 = vmax.f32 %v3560_v54, %v1642_v50  ;;  %v1726_v33 = vmax.f32 %v1662_v17, 0.0  ;;  %v1636_v40 = vmul.f32 %v3609_v9, %v3489_v62 }
 0x1fb   : > { %v1731_v48 = vmax.f32 %v1667_v38, 0.0  ;;  %v1646_v13 = vmul.f32 %v3609_v9, %v3507_v59  ;;  %v1640_v58 = vmul.f32 %v3609_v9, %v3496_v35  ;;  %v1650_v51 = vmul.f32 %v3609_v9, %v3512_v15  ;;  %v3997_v15 = vld [vmem:[#allocation14_spill] sm:$0xff] }
 0x1fc   : > { %v1678_v14 = vmax.f32 %v3564_v39, %v1636_v40  ;;  %v1644_v61 = vmul.f32 %v3609_v9, %v3504_v56  ;;  %v1654_v62 = vmul.f32 %v3609_v9, %v3525_v49  ;;  %v1648_v54 = vmul.f32 %v3609_v9, %v3510_v20  ;;  %v3999_v49 = vld [vmem:[#allocation16_spill] sm:$0xff] }
 0x1fd   : > { %v1728_v17 = vmax.f32 %v1664_v1, 0.0  ;;  %v1683_v39 = vmax.f32 %v3568_v37, %v1646_v13  ;;  %v1680_v59 = vmax.f32 %v3573_v57, %v1640_v58  ;;  %v1652_v35 = vmul.f32 %v3609_v9, %v3518_v3 }
 0x1fe   : > { %1836 = vmax.xlane.f32.xlu1 %v1729_v23  ;;  %1830 = vmax.xlane.f32.xlu0 %v1726_v33  ;;  %v1685_v8 = vmax.f32 %v3996_v2, %v1650_v51  ;;  %v1682_v55 = vmax.f32 %v3997_v15, %v1644_v61  ;;  %v1687_v56 = vmax.f32 %v3585_v27, %v1654_v62  ;;  %v1733_v16 = vmax.f32 %v1669_v7, 0.0 }
 0x1ff   : > { %v1684_v32 = vmax.f32 %v3998_v11, %v1648_v54  ;;  %v1686_v20 = vmax.f32 %v3999_v49, %v1652_v35  ;;  %v1656_v37 = vmul.f32 %v3609_v9, %v4000_v4  ;;  %v1730_v57 = vmax.f32 %v1666_v63, 0.0 }
 0x200   : > { %v1735_v3 = vmax.f32 %v1671_v47, 0.0  ;;  %v1732_v44 = vmax.f32 %v1668_v41, 0.0  ;;  %v1737_v27 = vmax.f32 %v1673_v31, 0.0  ;;  %v1734_v21 = vmax.f32 %v1670_v25, 0.0 }
 0x201   : > { %v1688_v24 = vmax.f32 %v4001_v46, %v1656_v37  ;;  %v1739_v43 = vmax.f32 %v1675_v18, 0.0  ;;  %v1736_v52 = vmax.f32 %v1672_v28, 0.0  ;;  %v1741_v38 = vmax.f32 %v1677_v6, 0.0 }
 0x202   : > { %1840 = vmax.xlane.f32.xlu1 %v1731_v48  ;;  %1834 = vmax.xlane.f32.xlu0 %v1728_v17  ;;  %v1738_v9 = vmax.f32 %v1674_v5, 0.0  ;;  %v1743_v1 = vmax.f32 %v1679_v12, 0.0  ;;  %v1740_v7 = vmax.f32 %v1676_v10, 0.0  ;;  %v1745_v30 = vmax.f32 %v1681_v22, 0.0 }
 0x203   : > { %v1742_v60 = vmax.f32 %v1678_v14, 0.0  ;;  %v1747_v63 = vmax.f32 %v1683_v39, 0.0  ;;  %v1744_v47 = vmax.f32 %v1680_v59, 0.0  ;;  %v1749_v41 = vmax.f32 %v1685_v8, 0.0 }
 0x204   : > { %v1746_v31 = vmax.f32 %v1682_v55, 0.0  ;;  %v1751_v25 = vmax.f32 %v1687_v56, 0.0  ;;  %v1748_v45 = vmax.f32 %v1684_v32, 0.0  ;;  %v1750_v34 = vmax.f32 %v1686_v20, 0.0 }
 0x205   : > { %v1752_v36 = vmax.f32 %v1688_v24, 0.0 }
 0x206   : > { %1844 = vmax.xlane.f32.xlu1 %v1733_v16  ;;  %1838 = vmax.xlane.f32.xlu0 %v1730_v57 }
 0x20a   : > { %1848 = vmax.xlane.f32.xlu1 %v1735_v3  ;;  %1842 = vmax.xlane.f32.xlu0 %v1732_v44 }
 0x20e   : > { %1852 = vmax.xlane.f32.xlu1 %v1737_v27  ;;  %1846 = vmax.xlane.f32.xlu0 %v1734_v21 }
 0x212   : > { %1856 = vmax.xlane.f32.xlu1 %v1739_v43  ;;  %1850 = vmax.xlane.f32.xlu0 %v1736_v52 }
 0x216   : > { %1860 = vmax.xlane.f32.xlu1 %v1741_v38  ;;  %1854 = vmax.xlane.f32.xlu0 %v1738_v9 }
 0x21a   : > { %1864 = vmax.xlane.f32.xlu1 %v1743_v1  ;;  %1858 = vmax.xlane.f32.xlu0 %v1740_v7 }
 0x21e   : > { %1868 = vmax.xlane.f32.xlu1 %v1745_v30  ;;  %1862 = vmax.xlane.f32.xlu0 %v1742_v60 }
 0x222   : > { %1872 = vmax.xlane.f32.xlu1 %v1747_v63  ;;  %1866 = vmax.xlane.f32.xlu0 %v1744_v47 }
 0x226   : > { %1876 = vmax.xlane.f32.xlu1 %v1749_v41  ;;  %1870 = vmax.xlane.f32.xlu0 %v1746_v31 }
 0x22a   : > { %1880 = vmax.xlane.f32.xlu1 %v1751_v25  ;;  %1874 = vmax.xlane.f32.xlu0 %v1748_v45 }
 0x22e   : > { %1878 = vmax.xlane.f32.xlu0 %v1750_v34 }
 0x232   : > { %1882 = vmax.xlane.f32.xlu0 %v1752_v36 }
 0x27f   : > { %v1823_v53 = vpop.xlane.xlu1 %1822  ;;  %v1821_v42 = vpop.xlane.xlu0 %1820 }
 0x280   : > { %v1884_v29 = vadd.f32 %v1823_v53, %v1821_v42 }
 0x283   : > { %v1829_v0 = vpop.xlane.xlu1 %1828  ;;  %v1825_v26 = vpop.xlane.xlu0 %1824 }
 0x284   : > { %v1885_v19 = vadd.f32 %v1884_v29, %v1825_v26 }
 0x287   : > { %v1833_v50 = vpop.xlane.xlu1 %1832  ;;  %v1827_v18 = vpop.xlane.xlu0 %1826 }
 0x288   : > { %v1886_v28 = vadd.f32 %v1885_v19, %v1827_v18 }
 0x28a   : > { %v1887_v6 = vadd.f32 %v1886_v28, %v1829_v0 }
 0x28b   : > { %v1837_v5 = vpop.xlane.xlu1 %1836  ;;  %v1831_v12 = vpop.xlane.xlu0 %1830 }
 0x28c   : > { %v1888_v10 = vadd.f32 %v1887_v6, %v1831_v12 }
 0x28e   : > { %v1889_v22 = vadd.f32 %v1888_v10, %v1833_v50 }
 0x28f   : > { %v1841_v23 = vpop.xlane.xlu1 %1840  ;;  %v1835_v33 = vpop.xlane.xlu0 %1834 }
 0x290   : > { %v1890_v40 = vadd.f32 %v1889_v22, %v1835_v33 }
 0x292   : > { %v1891_v48 = vadd.f32 %v1890_v40, %v1837_v5 }
 0x293   : > { %v1845_v14 = vpop.xlane.xlu1 %1844  ;;  %v1839_v13 = vpop.xlane.xlu0 %1838 }
 0x294   : > { %v1892_v58 = vadd.f32 %v1891_v48, %v1839_v13 }
 0x296   : > { %v1893_v51 = vadd.f32 %v1892_v58, %v1841_v23 }
 0x297   : > { %v1849_v61 = vpop.xlane.xlu1 %1848  ;;  %v1843_v62 = vpop.xlane.xlu0 %1842 }
 0x298   : > { %v1894_v54 = vadd.f32 %v1893_v51, %v1843_v62 }
 0x29a   : > { %v1895_v17 = vadd.f32 %v1894_v54, %v1845_v14 }
 0x29b   : > { %v1853_v39 = vpop.xlane.xlu1 %1852  ;;  %v1847_v59 = vpop.xlane.xlu0 %1846 }
 0x29c   : > { %v1896_v35 = vadd.f32 %v1895_v17, %v1847_v59 }
 0x29e   : > { %v1897_v2 = vadd.f32 %v1896_v35, %v1849_v61 }
 0x29f   : > { %v1857_v8 = vpop.xlane.xlu1 %1856  ;;  %v1851_v15 = vpop.xlane.xlu0 %1850 }
 0x2a0   : > { %v1898_v55 = vadd.f32 %v1897_v2, %v1851_v15 }
 0x2a2   : > { %v1899_v56 = vadd.f32 %v1898_v55, %v1853_v39 }
 0x2a3   : > { %v1861_v11 = vpop.xlane.xlu1 %1860  ;;  %v1855_v32 = vpop.xlane.xlu0 %1854 }
 0x2a4   : > { %v1900_v49 = vadd.f32 %v1899_v56, %v1855_v32 }
 0x2a6   : > { %v1901_v20 = vadd.f32 %v1900_v49, %v1857_v8 }
 0x2a7   : > { %v1865_v4 = vpop.xlane.xlu1 %1864  ;;  %v1859_v37 = vpop.xlane.xlu0 %1858 }
 0x2a8   : > { %v1902_v16 = vadd.f32 %v1901_v20, %v1859_v37 }
 0x2aa   : > { %v1903_v57 = vadd.f32 %v1902_v16, %v1861_v11 }
 0x2ab   : > { %v1869_v46 = vpop.xlane.xlu1 %1868  ;;  %v1863_v24 = vpop.xlane.xlu0 %1862 }
 0x2ac   : > { %v1904_v3 = vadd.f32 %v1903_v57, %v1863_v24 }
 0x2ae   : > { %v1905_v44 = vadd.f32 %v1904_v3, %v1865_v4 }
 0x2af   : > { %v1867_v27 = vpop.xlane.xlu0 %1866  ;;  %v1873_v43 = vpop.xlane.xlu1 %1872 }
 0x2b0   : > { %v1906_v21 = vadd.f32 %v1905_v44, %v1867_v27 }
 0x2b2   : > { %v1907_v52 = vadd.f32 %v1906_v21, %v1869_v46 }
 0x2b3   : > { %v1871_v38 = vpop.xlane.xlu0 %1870  ;;  %v1877_v7 = vpop.xlane.xlu1 %1876 }
 0x2b4   : > { %v1908_v9 = vadd.f32 %v1907_v52, %v1871_v38 }
 0x2b6   : > { %v1909_v1 = vadd.f32 %v1908_v9, %v1873_v43 }
 0x2b7   : > { %v1875_v30 = vpop.xlane.xlu0 %1874  ;;  %v1881_v31 = vpop.xlane.xlu1 %1880 }
 0x2b8   : > { %v1910_v60 = vadd.f32 %v1909_v1, %v1875_v30 }
 0x2ba   : > { %v1911_v63 = vadd.f32 %v1910_v60, %v1877_v7 }
 0x2bb   : > { %v1879_v47 = vpop.xlane.xlu0 %1878 }
 0x2bc   : > { %v1912_v41 = vadd.f32 %v1911_v63, %v1879_v47 }
 0x2be   : > { %v1913_v25 = vadd.f32 %v1912_v41, %v1881_v31 }
 0x2bf   : > { %v1883_v45 = vpop.xlane.xlu0 %1882 }
 0x2c0   : > { %v1914_v34 = vadd.f32 %v1913_v25, %v1883_v45 }
 0x2c2   : > { %v1915_v36 = vrot.slane %v1914_v34, 4 }
 0x2c4   : > { %v1916_v53 = vadd.f32 %v1915_v36, %v1914_v34 }
 0x2c6   : > { %v1917_v42 = vrot.slane %v1916_v53, 2 }
 0x2c8   : > { %v1918_v0 = vadd.f32 %v1917_v42, %v1916_v53 }
 0x2ca   : > { %v1919_v26 = vrot.slane %v1918_v0, 1 }
 0x2cc   : > { %v1920_v29 = vadd.f32 %v1919_v26, %v1918_v0 }
 0x2ce   : > { %1922 = vst.msk [vmem:[%s294_s10] sm:$0x1] %vm1921_vm1, %v1920_v29 }
 0x2cf PF: > { %s14_s17 = sadd.s32 1, %s2260_s17   ;;  %s4002_s15 = smov %s2256_s16 }
 0x2d0   : > { %p11_p5 = scmp.ge.s32.totalorder %s14_s17, 6   ;;  %s4003_s16 = smov %s4005_s18 }
 0x2d2   :  { %13 = sbr.rel (!%p11_p5) target bundleno = 2 (0x2), region = 83 }

</bundles_post_ra>
